<compile_context>
chip_gen: v5e
topology: v5e:2x2
jax: 0.10.0
libtpu: 0.0.40
codegen_flags: <defaults>
</compile_context>

<pallas_src>
import numpy as np
import jax
import jax.numpy as jnp
from jax.experimental import pallas as pl
from jax.experimental.pallas import tpu as pltpu

EPS = 1e-5       # PyTorch BatchNorm1d default eps
LANES = 128      # TPU lane width
POOL_K = 3       # MaxPool1d(kernel_size=3) -> stride defaults to kernel_size


def _round_up(n, m):
    return ((n + m - 1) // m) * m


def cnn_net8_kernel(x_ref, w1_ref, b1_ref, g1_ref, be1_ref,
                    w2_ref, b2_ref, g2_ref, be2_ref,
                    fw1_ref, fb1_ref, fw2_ref, fb2_ref,
                    spool_ref, out_ref):
    N, L, Cp = x_ref.shape          # (2, 32, 128) padded input channels
    K = w1_ref.shape[0]             # conv kernel size (3)
    C1p = w1_ref.shape[2]           # 50 -> 128
    C2p = w2_ref.shape[2]           # 100 -> 128
    PK = spool_ref.shape[0]         # pool kernel size (3)
    L1 = L - (K - 1)                # conv1 output length
    P1 = spool_ref.shape[1] // N    # maxpool1 output length
    L2 = P1 - (K - 1)               # conv2 output length

    # ---- conv1: sum of K shifted matmuls (no lane-axis im2col concat) ----
    y1 = jnp.dot(x_ref[:, 0:L1, :].reshape(N * L1, Cp), w1_ref[0],
                 preferred_element_type=jnp.float32)
    for k in range(1, K):
        y1 = y1 + jnp.dot(x_ref[:, k:k + L1, :].reshape(N * L1, Cp), w1_ref[k],
                          preferred_element_type=jnp.float32)
    y1 = y1 + b1_ref[...]                                     # (N*L1, C1p)

    # ---- batchnorm1 (batch stats, biased var) + ReLU, FMA-folded ----
    mu1 = jnp.mean(y1, axis=0, keepdims=True)                 # (1, C1p)
    y1c = y1 - mu1                                            # centered once
    var1 = jnp.mean(y1c * y1c, axis=0, keepdims=True)
    s1 = jax.lax.rsqrt(var1 + EPS) * g1_ref[...]              # row-level math, free
    y1n = jnp.maximum(y1c * s1 + be1_ref[...], 0.0)           # (N*L1, C1p)

    # ---- maxpool1 (kernel=3, stride=3): max of three one-hot row-pick matmuls ----
    # pooled[n, p] = max_k y1n[n, 3p + k]; each pick is a (N*P1, N*L1) constant
    # 0/1 matmul on the MXU -> no group-of-3 sublane reshape on the XLU.
    pooled = jnp.dot(spool_ref[0], y1n, preferred_element_type=jnp.float32)
    for k in range(1, PK):
        pooled = jnp.maximum(
            pooled, jnp.dot(spool_ref[k], y1n, preferred_element_type=jnp.float32))
    pooled3 = pooled.reshape(N, P1, C1p)                      # (N, P1, C1p)

    # ---- conv2: sum of K shifted matmuls ----
    y2 = jnp.dot(pooled3[:, 0:L2, :].reshape(N * L2, C1p), w2_ref[0],
                 preferred_element_type=jnp.float32)
    for k in range(1, K):
        y2 = y2 + jnp.dot(pooled3[:, k:k + L2, :].reshape(N * L2, C1p), w2_ref[k],
                          preferred_element_type=jnp.float32)
    y2 = y2 + b2_ref[...]                                     # (N*L2, C2p)

    # ---- batchnorm2 + ReLU, FMA-folded ----
    mu2 = jnp.mean(y2, axis=0, keepdims=True)
    y2c = y2 - mu2
    var2 = jnp.mean(y2c * y2c, axis=0, keepdims=True)
    s2 = jax.lax.rsqrt(var2 + EPS) * g2_ref[...]
    y2n = jnp.maximum(y2c * s2 + be2_ref[...], 0.0)

    # ---- global max over length + batched fc1/ReLU/fc2, one lane-dense store ----
    # L2 == 8 here, so the axis=1 reduce covers exactly one 8-sublane group.
    # TODO(synk): if shapes change so L2 % 8 != 0, switch to a tree of
    # jnp.maximum over row slices instead of this reshape+reduce.
    feat = jnp.max(y2n.reshape(N, L2, C2p), axis=1)           # (N, C2p)
    h = jnp.maximum(
        jnp.dot(feat, fw1_ref[...], preferred_element_type=jnp.float32)
        + fb1_ref[...], 0.0)                                  # (N, F1p)
    out_ref[...] = (jnp.dot(h, fw2_ref[...], preferred_element_type=jnp.float32)
                    + fb2_ref[...])                           # (N, OUTp)


def cnn_net8_forward(x_ncl, params):
    """x_ncl: PyTorch-layout input (N, C_in, L). Returns (N, out_channels)."""
    (w1, b1, g1, be1, w2, b2, g2, be2, fw1, fb1, fw2, fb2) = params
    N, Cin, L = x_ncl.shape
    K, _, C1 = w1.shape
    C2 = w2.shape[2]
    F1 = fw1.shape[1]
    out_ch = fw2.shape[1]

    L1 = L - (K - 1)
    P1 = L1 // POOL_K
    L2 = P1 - (K - 1)

    # Zero-pad every channel-like dim to 128 lanes (lane-dense activations).
    Cinp = _round_up(Cin, LANES)
    C1p = _round_up(C1, LANES)
    C2p = _round_up(C2, LANES)
    F1p = _round_up(F1, LANES)
    OUTp = _round_up(out_ch, LANES)

    # NCL -> NLC so channels sit on lanes (a few KB at these shapes).
    # TODO(synk): at large N*L, fuse this transpose into the kernel (accept NLC
    # input directly or use allow_input_fusion) to avoid an extra HBM pass.
    x = jnp.transpose(x_ncl, (0, 2, 1)).astype(jnp.float32)
    x = jnp.pad(x, ((0, 0), (0, 0), (0, Cinp - Cin)))

    f32 = jnp.float32
    w1p = jnp.pad(w1.astype(f32), ((0, 0), (0, Cinp - Cin), (0, C1p - C1)))
    b1p = jnp.pad(b1.astype(f32), ((0, 0), (0, C1p - C1)))
    g1p = jnp.pad(g1.astype(f32), ((0, 0), (0, C1p - C1)))
    be1p = jnp.pad(be1.astype(f32), ((0, 0), (0, C1p - C1)))
    w2p = jnp.pad(w2.astype(f32), ((0, 0), (0, C1p - C1), (0, C2p - C2)))
    b2p = jnp.pad(b2.astype(f32), ((0, 0), (0, C2p - C2)))
    g2p = jnp.pad(g2.astype(f32), ((0, 0), (0, C2p - C2)))
    be2p = jnp.pad(be2.astype(f32), ((0, 0), (0, C2p - C2)))
    fw1p = jnp.pad(fw1.astype(f32), ((0, C2p - C2), (0, F1p - F1)))
    fb1p = jnp.pad(fb1.astype(f32), ((0, 0), (0, F1p - F1)))
    fw2p = jnp.pad(fw2.astype(f32), ((0, F1p - F1), (0, OUTp - out_ch)))
    fb2p = jnp.pad(fb2.astype(f32), ((0, 0), (0, OUTp - out_ch)))

    # Constant one-hot matrices for the stride-3 pool row picks (host-built).
    s_pool = np.zeros((POOL_K, N * P1, N * L1), np.float32)
    for k in range(POOL_K):
        for n in range(N):
            for p in range(P1):
                s_pool[k, n * P1 + p, n * L1 + POOL_K * p + k] = 1.0
    s_pool = jnp.asarray(s_pool)

    args = (x, w1p, b1p, g1p, be1p, w2p, b2p, g2p, be2p,
            fw1p, fb1p, fw2p, fb2p, s_pool)
    in_specs = [pl.BlockSpec(memory_space=pltpu.MemorySpace.VMEM) for _ in args]

    # Whole problem (a few hundred KB padded) fits trivially in VMEM -> no grid;
    # a grid here would only pay per-step overhead.
    # TODO(synk): if N/L scale up, add a batch-tile grid with
    # dimension_semantics=("parallel",) (engages both v7x TensorCores), a
    # two-pass cross-tile BN reduction, bf16 matmul operands with f32
    # accumulation, and on v7x roughly half the v6e block size plus an explicit
    # vmem_limit_bytes (v7x has 64 MiB VMEM vs 128 MiB on v5e/v6e).
    out = pl.pallas_call(
        cnn_net8_kernel,
        out_shape=jax.ShapeDtypeStruct((N, OUTp), jnp.float32),
        in_specs=in_specs,
        out_specs=pl.BlockSpec(memory_space=pltpu.MemorySpace.VMEM),
    )(*args)
    return out[:, :out_ch]


def reference_forward(x_ncl, params):
    """Pure-JAX reference of the same math (unpadded), for verification."""
    (w1, b1, g1, be1, w2, b2, g2, be2, fw1, fb1, fw2, fb2) = params
    x = jnp.transpose(x_ncl, (0, 2, 1)).astype(jnp.float32)
    N, L, _ = x.shape
    K = w1.shape[0]
    L1 = L - (K - 1)
    y1 = sum(jnp.einsum('nlc,cd->nld', x[:, k:k + L1, :], w1[k]) for k in range(K)) + b1
    mu, var = jnp.mean(y1, axis=(0, 1)), jnp.var(y1, axis=(0, 1))
    y1 = jax.nn.relu((y1 - mu) / jnp.sqrt(var + EPS) * g1 + be1)
    P1 = L1 // POOL_K
    p = jnp.max(y1[:, :POOL_K * P1, :].reshape(N, P1, POOL_K, -1), axis=2)
    L2 = P1 - (K - 1)
    y2 = sum(jnp.einsum('nlc,cd->nld', p[:, k:k + L2, :], w2[k]) for k in range(K)) + b2
    mu2, var2 = jnp.mean(y2, axis=(0, 1)), jnp.var(y2, axis=(0, 1))
    y2 = jax.nn.relu((y2 - mu2) / jnp.sqrt(var2 + EPS) * g2 + be2)
    feat = jnp.max(y2, axis=1)
    h = jax.nn.relu(feat @ fw1 + fb1)
    return h @ fw2 + fb2


if __name__ == "__main__":
    in_ch, hid1, hid2, fc_hid, out_ch = 20, 50, 100, 20, 2
    N, L = 2, 32

    key = jax.random.PRNGKey(0)
    ks = jax.random.split(key, 13)

    def u(k, shape, scale):
        return jax.random.uniform(k, shape, jnp.float32, -1.0, 1.0) * scale

    w1 = u(ks[0], (3, in_ch, hid1), 1.0 / (3 * in_ch) ** 0.5)
    b1 = u(ks[1], (1, hid1), 0.1)
    g1 = 1.0 + u(ks[2], (1, hid1), 0.1)
    be1 = u(ks[3], (1, hid1), 0.1)
    w2 = u(ks[4], (3, hid1, hid2), 1.0 / (3 * hid1) ** 0.5)
    b2 = u(ks[5], (1, hid2), 0.1)
    g2 = 1.0 + u(ks[6], (1, hid2), 0.1)
    be2 = u(ks[7], (1, hid2), 0.1)
    fw1 = u(ks[8], (hid2, fc_hid), 1.0 / hid2 ** 0.5)
    fb1 = u(ks[9], (1, fc_hid), 0.1)
    fw2 = u(ks[10], (fc_hid, out_ch), 1.0 / fc_hid ** 0.5)
    fb2 = u(ks[11], (1, out_ch), 0.1)
    params = (w1, b1, g1, be1, w2, b2, g2, be2, fw1, fb1, fw2, fb2)

    # PyTorch NCL-layout input
    x = jax.random.normal(ks[12], (N, in_ch, L), jnp.float32)

    out = jax.block_until_ready(cnn_net8_forward(x, params))
    ref = reference_forward(x, params)

    assert out.shape == (N, out_ch), out.shape
    assert jnp.allclose(out, ref, atol=1e-3, rtol=1e-3), (out, ref)
    print("KERNEL_OK")
</pallas_src>

<mosaic_0001>
module attributes {stable_mosaic.version = 11 : i64} {
  func.func @cnn_net8_kernel(%arg0: memref<2x32x128xf32, #tpu.memory_space<vmem>>, %arg1: memref<3x128x128xf32, #tpu.memory_space<vmem>>, %arg2: memref<1x128xf32, #tpu.memory_space<vmem>>, %arg3: memref<1x128xf32, #tpu.memory_space<vmem>>, %arg4: memref<1x128xf32, #tpu.memory_space<vmem>>, %arg5: memref<3x128x128xf32, #tpu.memory_space<vmem>>, %arg6: memref<1x128xf32, #tpu.memory_space<vmem>>, %arg7: memref<1x128xf32, #tpu.memory_space<vmem>>, %arg8: memref<1x128xf32, #tpu.memory_space<vmem>>, %arg9: memref<128x128xf32, #tpu.memory_space<vmem>>, %arg10: memref<1x128xf32, #tpu.memory_space<vmem>>, %arg11: memref<128x128xf32, #tpu.memory_space<vmem>>, %arg12: memref<1x128xf32, #tpu.memory_space<vmem>>, %arg13: memref<3x20x60xf32, #tpu.memory_space<vmem>>, %arg14: memref<2x128xf32, #tpu.memory_space<vmem>>) attributes {dimension_semantics = [], scalar_prefetch = 0 : i64, scratch_operands = 0 : i64, tpu.core_type = #tpu.core_type<tc>} {
    %c0 = arith.constant 0 : index
    %c0_0 = arith.constant 0 : index
    %c0_1 = arith.constant 0 : index
    %0 = vector.load %arg0[%c0, %c0_0, %c0_1] : memref<2x32x128xf32, #tpu.memory_space<vmem>>, vector<2x30x128xf32>
    %1 = vector.shape_cast %0 : vector<2x30x128xf32> to vector<60x128xf32>
    %c0_2 = arith.constant 0 : index
    %c0_3 = arith.constant 0 : index
    %c0_4 = arith.constant 0 : index
    %2 = vector.load %arg1[%c0_2, %c0_3, %c0_4] : memref<3x128x128xf32, #tpu.memory_space<vmem>>, vector<1x128x128xf32>
    %3 = vector.shape_cast %2 : vector<1x128x128xf32> to vector<128x128xf32>
    %cst = arith.constant dense<0.000000e+00> : vector<60x128xf32>
    %4 = tpu.matmul %1, %3, %cst {dimension_numbers = #tpu.dot_dimension_numbers<[1], [0], [0], [1], [0, 0, 1, 1], [], []>} : vector<60x128xf32>, vector<128x128xf32>, vector<60x128xf32> -> vector<60x128xf32>
    %c0_5 = arith.constant 0 : index
    %c1 = arith.constant 1 : index
    %c0_6 = arith.constant 0 : index
    %5 = vector.load %arg0[%c0_5, %c1, %c0_6] : memref<2x32x128xf32, #tpu.memory_space<vmem>>, vector<2x30x128xf32>
    %6 = vector.shape_cast %5 : vector<2x30x128xf32> to vector<60x128xf32>
    %c1_7 = arith.constant 1 : index
    %c0_8 = arith.constant 0 : index
    %c0_9 = arith.constant 0 : index
    %7 = vector.load %arg1[%c1_7, %c0_8, %c0_9] : memref<3x128x128xf32, #tpu.memory_space<vmem>>, vector<1x128x128xf32>
    %8 = vector.shape_cast %7 : vector<1x128x128xf32> to vector<128x128xf32>
    %cst_10 = arith.constant dense<0.000000e+00> : vector<60x128xf32>
    %9 = tpu.matmul %6, %8, %cst_10 {dimension_numbers = #tpu.dot_dimension_numbers<[1], [0], [0], [1], [0, 0, 1, 1], [], []>} : vector<60x128xf32>, vector<128x128xf32>, vector<60x128xf32> -> vector<60x128xf32>
    %10 = arith.addf %4, %9 : vector<60x128xf32>
    %c0_11 = arith.constant 0 : index
    %c2 = arith.constant 2 : index
    %c0_12 = arith.constant 0 : index
    %11 = vector.load %arg0[%c0_11, %c2, %c0_12] : memref<2x32x128xf32, #tpu.memory_space<vmem>>, vector<2x30x128xf32>
    %12 = vector.shape_cast %11 : vector<2x30x128xf32> to vector<60x128xf32>
    %c2_13 = arith.constant 2 : index
    %c0_14 = arith.constant 0 : index
    %c0_15 = arith.constant 0 : index
    %13 = vector.load %arg1[%c2_13, %c0_14, %c0_15] : memref<3x128x128xf32, #tpu.memory_space<vmem>>, vector<1x128x128xf32>
    %14 = vector.shape_cast %13 : vector<1x128x128xf32> to vector<128x128xf32>
    %cst_16 = arith.constant dense<0.000000e+00> : vector<60x128xf32>
    %15 = tpu.matmul %12, %14, %cst_16 {dimension_numbers = #tpu.dot_dimension_numbers<[1], [0], [0], [1], [0, 0, 1, 1], [], []>} : vector<60x128xf32>, vector<128x128xf32>, vector<60x128xf32> -> vector<60x128xf32>
    %16 = arith.addf %10, %15 : vector<60x128xf32>
    %c0_17 = arith.constant 0 : index
    %c0_18 = arith.constant 0 : index
    %17 = vector.load %arg2[%c0_17, %c0_18] : memref<1x128xf32, #tpu.memory_space<vmem>>, vector<1x128xf32>
    %18 = vector.broadcast %17 : vector<1x128xf32> to vector<60x128xf32>
    %19 = arith.addf %16, %18 : vector<60x128xf32>
    %cst_19 = arith.constant dense<0.000000e+00> : vector<128xf32>
    %20 = vector.multi_reduction <add>, %19, %cst_19 [0] : vector<60x128xf32> to vector<128xf32>
    %21 = vector.shape_cast %20 : vector<128xf32> to vector<1x128xf32>
    %cst_20 = arith.constant 6.000000e+01 : f32
    %22 = vector.broadcast %cst_20 : f32 to vector<1x128xf32>
    %23 = arith.divf %21, %22 : vector<1x128xf32>
    %24 = vector.broadcast %23 : vector<1x128xf32> to vector<60x128xf32>
    %25 = arith.subf %19, %24 : vector<60x128xf32>
    %26 = arith.mulf %25, %25 : vector<60x128xf32>
    %cst_21 = arith.constant dense<0.000000e+00> : vector<128xf32>
    %27 = vector.multi_reduction <add>, %26, %cst_21 [0] : vector<60x128xf32> to vector<128xf32>
    %28 = vector.shape_cast %27 : vector<128xf32> to vector<1x128xf32>
    %cst_22 = arith.constant 6.000000e+01 : f32
    %29 = vector.broadcast %cst_22 : f32 to vector<1x128xf32>
    %30 = arith.divf %28, %29 : vector<1x128xf32>
    %cst_23 = arith.constant 9.99999974E-6 : f32
    %31 = vector.broadcast %cst_23 : f32 to vector<1x128xf32>
    %32 = arith.addf %30, %31 : vector<1x128xf32>
    %33 = math.rsqrt %32 : vector<1x128xf32>
    %c0_24 = arith.constant 0 : index
    %c0_25 = arith.constant 0 : index
    %34 = vector.load %arg3[%c0_24, %c0_25] : memref<1x128xf32, #tpu.memory_space<vmem>>, vector<1x128xf32>
    %35 = arith.mulf %33, %34 : vector<1x128xf32>
    %36 = vector.broadcast %35 : vector<1x128xf32> to vector<60x128xf32>
    %37 = arith.mulf %25, %36 : vector<60x128xf32>
    %c0_26 = arith.constant 0 : index
    %c0_27 = arith.constant 0 : index
    %38 = vector.load %arg4[%c0_26, %c0_27] : memref<1x128xf32, #tpu.memory_space<vmem>>, vector<1x128xf32>
    %39 = vector.broadcast %38 : vector<1x128xf32> to vector<60x128xf32>
    %40 = arith.addf %37, %39 : vector<60x128xf32>
    %cst_28 = arith.constant 0.000000e+00 : f32
    %41 = vector.broadcast %cst_28 : f32 to vector<60x128xf32>
    %42 = arith.maximumf %40, %41 : vector<60x128xf32>
    %c0_29 = arith.constant 0 : index
    %c0_30 = arith.constant 0 : index
    %c0_31 = arith.constant 0 : index
    %43 = vector.load %arg13[%c0_29, %c0_30, %c0_31] : memref<3x20x60xf32, #tpu.memory_space<vmem>>, vector<1x20x60xf32>
    %44 = vector.shape_cast %43 : vector<1x20x60xf32> to vector<20x60xf32>
    %cst_32 = arith.constant dense<0.000000e+00> : vector<20x128xf32>
    %45 = tpu.matmul %44, %42, %cst_32 {dimension_numbers = #tpu.dot_dimension_numbers<[1], [0], [0], [1], [0, 0, 1, 1], [], []>} : vector<20x60xf32>, vector<60x128xf32>, vector<20x128xf32> -> vector<20x128xf32>
    %c1_33 = arith.constant 1 : index
    %c0_34 = arith.constant 0 : index
    %c0_35 = arith.constant 0 : index
    %46 = vector.load %arg13[%c1_33, %c0_34, %c0_35] : memref<3x20x60xf32, #tpu.memory_space<vmem>>, vector<1x20x60xf32>
    %47 = vector.shape_cast %46 : vector<1x20x60xf32> to vector<20x60xf32>
    %cst_36 = arith.constant dense<0.000000e+00> : vector<20x128xf32>
    %48 = tpu.matmul %47, %42, %cst_36 {dimension_numbers = #tpu.dot_dimension_numbers<[1], [0], [0], [1], [0, 0, 1, 1], [], []>} : vector<20x60xf32>, vector<60x128xf32>, vector<20x128xf32> -> vector<20x128xf32>
    %49 = arith.maximumf %45, %48 : vector<20x128xf32>
    %c2_37 = arith.constant 2 : index
    %c0_38 = arith.constant 0 : index
    %c0_39 = arith.constant 0 : index
    %50 = vector.load %arg13[%c2_37, %c0_38, %c0_39] : memref<3x20x60xf32, #tpu.memory_space<vmem>>, vector<1x20x60xf32>
    %51 = vector.shape_cast %50 : vector<1x20x60xf32> to vector<20x60xf32>
    %cst_40 = arith.constant dense<0.000000e+00> : vector<20x128xf32>
    %52 = tpu.matmul %51, %42, %cst_40 {dimension_numbers = #tpu.dot_dimension_numbers<[1], [0], [0], [1], [0, 0, 1, 1], [], []>} : vector<20x60xf32>, vector<60x128xf32>, vector<20x128xf32> -> vector<20x128xf32>
    %53 = arith.maximumf %49, %52 : vector<20x128xf32>
    %54 = vector.shape_cast %53 : vector<20x128xf32> to vector<2x10x128xf32>
    %55 = vector.extract_strided_slice %54 {offsets = [0, 0, 0], sizes = [2, 8, 128], strides = [1, 1, 1]} : vector<2x10x128xf32> to vector<2x8x128xf32>
    %56 = vector.shape_cast %55 : vector<2x8x128xf32> to vector<16x128xf32>
    %c0_41 = arith.constant 0 : index
    %c0_42 = arith.constant 0 : index
    %c0_43 = arith.constant 0 : index
    %57 = vector.load %arg5[%c0_41, %c0_42, %c0_43] : memref<3x128x128xf32, #tpu.memory_space<vmem>>, vector<1x128x128xf32>
    %58 = vector.shape_cast %57 : vector<1x128x128xf32> to vector<128x128xf32>
    %cst_44 = arith.constant dense<0.000000e+00> : vector<16x128xf32>
    %59 = tpu.matmul %56, %58, %cst_44 {dimension_numbers = #tpu.dot_dimension_numbers<[1], [0], [0], [1], [0, 0, 1, 1], [], []>} : vector<16x128xf32>, vector<128x128xf32>, vector<16x128xf32> -> vector<16x128xf32>
    %60 = vector.extract_strided_slice %54 {offsets = [0, 1, 0], sizes = [2, 8, 128], strides = [1, 1, 1]} : vector<2x10x128xf32> to vector<2x8x128xf32>
    %61 = vector.shape_cast %60 : vector<2x8x128xf32> to vector<16x128xf32>
    %c1_45 = arith.constant 1 : index
    %c0_46 = arith.constant 0 : index
    %c0_47 = arith.constant 0 : index
    %62 = vector.load %arg5[%c1_45, %c0_46, %c0_47] : memref<3x128x128xf32, #tpu.memory_space<vmem>>, vector<1x128x128xf32>
    %63 = vector.shape_cast %62 : vector<1x128x128xf32> to vector<128x128xf32>
    %cst_48 = arith.constant dense<0.000000e+00> : vector<16x128xf32>
    %64 = tpu.matmul %61, %63, %cst_48 {dimension_numbers = #tpu.dot_dimension_numbers<[1], [0], [0], [1], [0, 0, 1, 1], [], []>} : vector<16x128xf32>, vector<128x128xf32>, vector<16x128xf32> -> vector<16x128xf32>
    %65 = arith.addf %59, %64 : vector<16x128xf32>
    %66 = vector.extract_strided_slice %54 {offsets = [0, 2, 0], sizes = [2, 8, 128], strides = [1, 1, 1]} : vector<2x10x128xf32> to vector<2x8x128xf32>
    %67 = vector.shape_cast %66 : vector<2x8x128xf32> to vector<16x128xf32>
    %c2_49 = arith.constant 2 : index
    %c0_50 = arith.constant 0 : index
    %c0_51 = arith.constant 0 : index
    %68 = vector.load %arg5[%c2_49, %c0_50, %c0_51] : memref<3x128x128xf32, #tpu.memory_space<vmem>>, vector<1x128x128xf32>
    %69 = vector.shape_cast %68 : vector<1x128x128xf32> to vector<128x128xf32>
    %cst_52 = arith.constant dense<0.000000e+00> : vector<16x128xf32>
    %70 = tpu.matmul %67, %69, %cst_52 {dimension_numbers = #tpu.dot_dimension_numbers<[1], [0], [0], [1], [0, 0, 1, 1], [], []>} : vector<16x128xf32>, vector<128x128xf32>, vector<16x128xf32> -> vector<16x128xf32>
    %71 = arith.addf %65, %70 : vector<16x128xf32>
    %c0_53 = arith.constant 0 : index
    %c0_54 = arith.constant 0 : index
    %72 = vector.load %arg6[%c0_53, %c0_54] : memref<1x128xf32, #tpu.memory_space<vmem>>, vector<1x128xf32>
    %73 = vector.broadcast %72 : vector<1x128xf32> to vector<16x128xf32>
    %74 = arith.addf %71, %73 : vector<16x128xf32>
    %cst_55 = arith.constant dense<0.000000e+00> : vector<128xf32>
    %75 = vector.multi_reduction <add>, %74, %cst_55 [0] : vector<16x128xf32> to vector<128xf32>
    %76 = vector.shape_cast %75 : vector<128xf32> to vector<1x128xf32>
    %cst_56 = arith.constant 1.600000e+01 : f32
    %77 = vector.broadcast %cst_56 : f32 to vector<1x128xf32>
    %78 = arith.divf %76, %77 : vector<1x128xf32>
    %79 = vector.broadcast %78 : vector<1x128xf32> to vector<16x128xf32>
    %80 = arith.subf %74, %79 : vector<16x128xf32>
    %81 = arith.mulf %80, %80 : vector<16x128xf32>
    %cst_57 = arith.constant dense<0.000000e+00> : vector<128xf32>
    %82 = vector.multi_reduction <add>, %81, %cst_57 [0] : vector<16x128xf32> to vector<128xf32>
    %83 = vector.shape_cast %82 : vector<128xf32> to vector<1x128xf32>
    %cst_58 = arith.constant 1.600000e+01 : f32
    %84 = vector.broadcast %cst_58 : f32 to vector<1x128xf32>
    %85 = arith.divf %83, %84 : vector<1x128xf32>
    %cst_59 = arith.constant 9.99999974E-6 : f32
    %86 = vector.broadcast %cst_59 : f32 to vector<1x128xf32>
    %87 = arith.addf %85, %86 : vector<1x128xf32>
    %88 = math.rsqrt %87 : vector<1x128xf32>
    %c0_60 = arith.constant 0 : index
    %c0_61 = arith.constant 0 : index
    %89 = vector.load %arg7[%c0_60, %c0_61] : memref<1x128xf32, #tpu.memory_space<vmem>>, vector<1x128xf32>
    %90 = arith.mulf %88, %89 : vector<1x128xf32>
    %91 = vector.broadcast %90 : vector<1x128xf32> to vector<16x128xf32>
    %92 = arith.mulf %80, %91 : vector<16x128xf32>
    %c0_62 = arith.constant 0 : index
    %c0_63 = arith.constant 0 : index
    %93 = vector.load %arg8[%c0_62, %c0_63] : memref<1x128xf32, #tpu.memory_space<vmem>>, vector<1x128xf32>
    %94 = vector.broadcast %93 : vector<1x128xf32> to vector<16x128xf32>
    %95 = arith.addf %92, %94 : vector<16x128xf32>
    %cst_64 = arith.constant 0.000000e+00 : f32
    %96 = vector.broadcast %cst_64 : f32 to vector<16x128xf32>
    %97 = arith.maximumf %95, %96 : vector<16x128xf32>
    %98 = vector.shape_cast %97 : vector<16x128xf32> to vector<2x8x128xf32>
    %cst_65 = arith.constant dense<0xFF800000> : vector<2x128xf32>
    %99 = vector.multi_reduction <maximumf>, %98, %cst_65 [1] : vector<2x8x128xf32> to vector<2x128xf32>
    %c0_66 = arith.constant 0 : index
    %c0_67 = arith.constant 0 : index
    %100 = vector.load %arg9[%c0_66, %c0_67] : memref<128x128xf32, #tpu.memory_space<vmem>>, vector<128x128xf32>
    %cst_68 = arith.constant dense<0.000000e+00> : vector<2x128xf32>
    %101 = tpu.matmul %99, %100, %cst_68 {dimension_numbers = #tpu.dot_dimension_numbers<[1], [0], [0], [1], [0, 0, 1, 1], [], []>} : vector<2x128xf32>, vector<128x128xf32>, vector<2x128xf32> -> vector<2x128xf32>
    %c0_69 = arith.constant 0 : index
    %c0_70 = arith.constant 0 : index
    %102 = vector.load %arg10[%c0_69, %c0_70] : memref<1x128xf32, #tpu.memory_space<vmem>>, vector<1x128xf32>
    %103 = vector.broadcast %102 : vector<1x128xf32> to vector<2x128xf32>
    %104 = arith.addf %101, %103 : vector<2x128xf32>
    %cst_71 = arith.constant 0.000000e+00 : f32
    %105 = vector.broadcast %cst_71 : f32 to vector<2x128xf32>
    %106 = arith.maximumf %104, %105 : vector<2x128xf32>
    %c0_72 = arith.constant 0 : index
    %c0_73 = arith.constant 0 : index
    %107 = vector.load %arg11[%c0_72, %c0_73] : memref<128x128xf32, #tpu.memory_space<vmem>>, vector<128x128xf32>
    %cst_74 = arith.constant dense<0.000000e+00> : vector<2x128xf32>
    %108 = tpu.matmul %106, %107, %cst_74 {dimension_numbers = #tpu.dot_dimension_numbers<[1], [0], [0], [1], [0, 0, 1, 1], [], []>} : vector<2x128xf32>, vector<128x128xf32>, vector<2x128xf32> -> vector<2x128xf32>
    %c0_75 = arith.constant 0 : index
    %c0_76 = arith.constant 0 : index
    %109 = vector.load %arg12[%c0_75, %c0_76] : memref<1x128xf32, #tpu.memory_space<vmem>>, vector<1x128xf32>
    %110 = vector.broadcast %109 : vector<1x128xf32> to vector<2x128xf32>
    %111 = arith.addf %108, %110 : vector<2x128xf32>
    %c0_77 = arith.constant 0 : index
    %c0_78 = arith.constant 0 : index
    %112 = vector.load %arg14[%c0_77, %c0_78] : memref<2x128xf32, #tpu.memory_space<vmem>>, vector<2x128xf32>
    tpu.vector_store %arg14[%c0_77, %c0_78], %111 {strides = array<i32>} : memref<2x128xf32, #tpu.memory_space<vmem>>, vector<2x128xf32>,
    return
  }
}

</mosaic_0001>

<bundles_post_ra>
// kernel: tpu_custom_call.1
= control target key start
LH: loop header
LB: loop body
LE: loop exit
PB: predicated region body
PF: predicated region fallthrough
CT: control target
= control target key end

     0   :  { %19 = vsyncpa [#allocation3], 0  ;;  %s1687_s0 = inlined_call_operand.hbm [shape: f32[2,32,128], index: 0, kind: input, shape index: {}]   ;;  %s1688_s1 = inlined_call_operand.hbm [shape: f32[3,128,128], index: 1, kind: input, shape index: {}]   ;;  %s1689_s2 = inlined_call_operand.vmem [shape: f32[1,128], index: 2, kind: input, shape index: {}]   ;;  %s1690_s3 = inlined_call_operand.vmem [shape: f32[1,128], index: 3, kind: input, shape index: {}]   ;;  %s1691_s4 = inlined_call_operand.vmem [shape: f32[1,128], index: 4, kind: input, shape index: {}]   ;;  %s1692_s5 = inlined_call_operand.hbm [shape: f32[3,128,128], index: 5, kind: input, shape index: {}]   ;;  %s1693_s6 = inlined_call_operand.vmem [shape: f32[1,128], index: 6, kind: input, shape index: {}]   ;;  %s1694_s7 = inlined_call_operand.vmem [shape: f32[1,128], index: 7, kind: input, shape index: {}]   ;;  %s1695_s8 = inlined_call_operand.vmem [shape: f32[1,128], index: 8, kind: input, shape index: {}]   ;;  %s1696_s9 = inlined_call_operand.hbm [shape: f32[128,128], index: 9, kind: input, shape index: {}]   ;;  %s1697_s10 = inlined_call_operand.vmem [shape: f32[1,128], index: 10, kind: input, shape index: {}]   ;;  %s1698_s11 = inlined_call_operand.hbm [shape: f32[128,128], index: 11, kind: input, shape index: {}]   ;;  %s1699_s12 = inlined_call_operand.vmem [shape: f32[1,128], index: 12, kind: input, shape index: {}]   ;;  %s1700_s13 = inlined_call_operand.hbm [shape: f32[3,20,60], index: 13, kind: input, shape index: {}]   ;;  %s1701_s14 = inlined_call_operand.hbm [shape: f32[2,128], index: 14, kind: output, shape index: {}]  }
   0x1   :  { %20 = vsyncpa [#allocation6], 0 }
   0x2   :  { %21 = vsyncpa [#allocation9], 0 }
   0x3   :  { %22 = vsyncpa [#allocation12], 0 }
   0x4   :  { %23 = vsyncpa [#allocation4], 0  ;;  %s41_s15 = sshll.u32 %s1688_s1, 4  ;;  %s1444_s16 = smov [#allocation5]   ;;  %s42_s15 = int_to_ptr.hbm [resolvable:$true] %s41_s15 }
   0x5   :  { %s43_s17 = sshll.u32 %s1444_s16, 4  ;;  %s79_s20 = sshll.u32 %s1696_s9, 4  ;;  %s44_s17 = int_to_ptr.vmem [resolvable:$true] %s43_s17  ;;  %s80_s20 = int_to_ptr.hbm [resolvable:$true] %s79_s20 }
   0x6   :  { %s1445_s21 = smov 128   ;;  %s1446_s22 = smov 8  }
   0x7   :  { %49 = dma.hbm_to_vmem [thread:$0]  %s42_s15, 6144, %s44_s17, [#allocation6], %s1445_s21, %s1445_s21, %s1446_s22  }
   0x8   :  { %s1447_s23 = smov [#allocation8]   ;;  %s28_s1 = sshll.u32 %s1687_s0, 4  ;;  %s29_s1 = int_to_ptr.hbm [resolvable:$true] %s28_s1 }
   0x9   :  { %s81_s24 = sshll.u32 %s1447_s23, 4  ;;  %s60_s28 = sshll.u32 %s1692_s5, 4  ;;  %s82_s24 = int_to_ptr.vmem [resolvable:$true] %s81_s24  ;;  %s61_s28 = int_to_ptr.hbm [resolvable:$true] %s60_s28 }
   0xa   :  { %87 = dma.hbm_to_vmem [thread:$0]  %s80_s20, 2048, %s82_s24, [#allocation9], %s1445_s21, %s1445_s21, %s1446_s22  }
   0xb   :  { %s1448_s29 = smov [#allocation2]   ;;  %s1449_s15 = smov [#allocation7]  }
   0xc   :  { %s30_s30 = sshll.u32 %s1448_s29, 4  ;;  %s62_s0 = sshll.u32 %s1449_s15, 4  ;;  %s31_s30 = int_to_ptr.vmem [resolvable:$true] %s30_s30  ;;  %s63_s0 = int_to_ptr.vmem [resolvable:$true] %s62_s0 }
   0xd   :  { %36 = dma.hbm_to_vmem [thread:$0]  %s29_s1, 1024, %s31_s30, [#allocation3], %s1445_s21, %s1445_s21, %s1446_s22  }
   0xe   :  { %s94_s18 = sshll.u32 %s1698_s11, 4  ;;  %s109_s20 = sshll.u32 %s1700_s13, 4  ;;  %s95_s18 = int_to_ptr.hbm [resolvable:$true] %s94_s18  ;;  %s110_s20 = int_to_ptr.hbm [resolvable:$true] %s109_s20 }
   0xf   :  { %68 = dma.hbm_to_vmem [thread:$0]  %s61_s28, 6144, %s63_s0, [#allocation6], %s1445_s21, %s1445_s21, %s1446_s22  }
  0x10   :  { %s1450_s23 = smov [#allocation10]   ;;  %s1451_s25 = smov [#allocation11]  }
  0x11   :  { %s96_s24 = sshll.u32 %s1450_s23, 4  ;;  %s111_s11 = sshll.u32 %s1451_s25, 4  ;;  %s97_s24 = int_to_ptr.vmem [resolvable:$true] %s96_s24  ;;  %s112_s11 = int_to_ptr.vmem [resolvable:$true] %s111_s11 }
  0x12   :  { %102 = dma.hbm_to_vmem [thread:$0]  %s95_s18, 2048, %s97_s24, [#allocation9], %s1445_s21, %s1445_s21, %s1446_s22  }
  0x13   :  { %117 = dma.hbm_to_vmem [thread:$0]  %s110_s20, 1152, %s112_s11, [#allocation12], %s1445_s21, %s1445_s21, %s1446_s22  }
  0x14   :  { %1434 = dma.done.wait [#allocation3], 1024  }
  0x15   :  { %1435 = vsyncadd [#allocation3], 4294966272 }
  0x16   :  { %1436 = dma.done.wait [#allocation6], 12288  }
  0x17   :  { %1437 = vsyncadd [#allocation6], 4294955008 }
  0x18   :  { %1438 = dma.done.wait [#allocation9], 4096  }
  0x19   :  { %1439 = vsyncadd [#allocation9], 4294963200 }
  0x1a   :  { %1440 = dma.done.wait [#allocation12], 1152  }
  0x1b   :  { %1441 = vsyncadd [#allocation12], 4294966144  ;;  %v493_v0 = vld [vmem:[#allocation5 + $0x178] sm:$0xff]  ;;  %v492_v1 = vld [vmem:[#allocation5 + $0x170] sm:$0xff]  ;;  %vm614_vm0 = vcmask 1043456   ;;  %vm707_vm5 = vcmask 490496  }
  0x1c   :  { %v250_v2 = vld [vmem:[#allocation5 + $0xf8] sm:$0xff]  ;;  %547 = vmatpush.msra.mxu2 %v493_v0  ;;  %v249_v4 = vld [vmem:[#allocation5 + $0xf0] sm:$0xff]  ;;  %v491_v5 = vld [vmem:[#allocation5 + $0x168] sm:$0xff]  ;;  %vm856_vm6 = vcmask 1040384   ;;  %vm857_vm7 = vcmask 1042434   ;;  %vm859_vm9 = vcmask 1044484  }
  0x1d   :  { %304 = vmatpush.msra.mxu0 %v250_v2  ;;  %v195_v3 = vld [vmem:[#allocation5 + $0x78] sm:$0xff]  ;;  %v194_v6 = vld [vmem:[#allocation5 + $0x70] sm:$0xff]  ;;  %v248_v7 = vld [vmem:[#allocation5 + $0xe8] sm:$0xff]  ;;  %vm861_vm11 = vcmask 1046534   ;;  %s1454_s15 = smov [#allocation13]   ;;  %s1214_s18 = sshll.u32 %s1701_s14, 4  ;;  %s1215_s18 = int_to_ptr.hbm [resolvable:$true] %s1214_s18 }
  0x1e   :  { %398 = vmatpush.msra.mxu1 %v195_v3  ;;  %548 = vmatpush.msra.mxu2 %v492_v1  ;;  %v193_v8 = vld [vmem:[#allocation5 + $0x68] sm:$0xff]  ;;  %v490_v9 = vld [vmem:[#allocation5 + $0x160] sm:$0xff]  ;;  %v489_v12 = vld [vmem:[#allocation5 + $0x158] sm:$0xff]  ;;  %s1212_s0 = sshll.u32 %s1454_s15, 4  ;;  %s1213_s0 = int_to_ptr.vmem [resolvable:$true] %s1212_s0 }
  0x1f   :  { %305 = vmatpush.msra.mxu0 %v249_v4  ;;  %v247_v10 = vld [vmem:[#allocation5 + $0xe0] sm:$0xff]  ;;  %v246_v13 = vld [vmem:[#allocation5 + $0xd8] sm:$0xff]  ;;  %v488_v15 = vld [vmem:[#allocation5 + $0x150] sm:$0xff] }
  0x20   :  { %399 = vmatpush.msra.mxu1 %v194_v6  ;;  %549 = vmatpush.msra.mxu2 %v491_v5  ;;  %v192_v11 = vld [vmem:[#allocation5 + $0x60] sm:$0xff]  ;;  %v191_v14 = vld [vmem:[#allocation5 + $0x58] sm:$0xff]  ;;  %v245_v16 = vld [vmem:[#allocation5 + $0xd0] sm:$0xff] }
  0x21   :  { %306 = vmatpush.msra.mxu0 %v248_v7  ;;  %v190_v17 = vld [vmem:[#allocation5 + $0x50] sm:$0xff]  ;;  %v487_v18 = vld [vmem:[#allocation5 + $0x148] sm:$0xff]  ;;  %v486_v21 = vld [vmem:[#allocation5 + $0x140] sm:$0xff] }
  0x22   :  { %400 = vmatpush.msra.mxu1 %v193_v8  ;;  %550 = vmatpush.msra.mxu2 %v490_v9  ;;  %v244_v19 = vld [vmem:[#allocation5 + $0xc8] sm:$0xff]  ;;  %v243_v22 = vld [vmem:[#allocation5 + $0xc0] sm:$0xff]  ;;  %v485_v24 = vld [vmem:[#allocation5 + $0x138] sm:$0xff] }
  0x23   :  { %307 = vmatpush.msra.mxu0 %v247_v10  ;;  %v189_v20 = vld [vmem:[#allocation5 + $0x48] sm:$0xff]  ;;  %v188_v23 = vld [vmem:[#allocation5 + $0x40] sm:$0xff]  ;;  %v242_v25 = vld [vmem:[#allocation5 + $0xb8] sm:$0xff] }
  0x24   :  { %401 = vmatpush.msra.mxu1 %v192_v11  ;;  %551 = vmatpush.msra.mxu2 %v489_v12  ;;  %v187_v26 = vld [vmem:[#allocation5 + $0x38] sm:$0xff]  ;;  %v484_v27 = vld [vmem:[#allocation5 + $0x130] sm:$0xff]  ;;  %v196_v30 = vld [vmem:[#allocation2 + $0x1] sm:$0xff] }
  0x25   :  { %308 = vmatpush.msra.mxu0 %v246_v13  ;;  %v241_v28 = vld [vmem:[#allocation5 + $0xb0] sm:$0xff]  ;;  %v483_v31 = vld [vmem:[#allocation5 + $0x128] sm:$0xff]  ;;  %v212_v33 = vrot.slane %v196_v30, 2  ;;  %v482_v34 = vld [vmem:[#allocation5 + $0x120] sm:$0xff]  ;;  %v213_v36 = vrot.slane %v196_v30, 4  ;;  %v214_v37 = vrot.slane %v196_v30, 6 }
  0x26   :  { %402 = vmatpush.msra.mxu1 %v191_v14  ;;  %552 = vmatpush.msra.mxu2 %v488_v15  ;;  %v186_v29 = vld [vmem:[#allocation5 + $0x30] sm:$0xff]  ;;  %v240_v32 = vld [vmem:[#allocation5 + $0xa8] sm:$0xff]  ;;  %v481_v38 = vld [vmem:[#allocation5 + $0x118] sm:$0xff]  ;;  %251 = vst [vmem:[#allocation1] ss:$4 sm:$0xff] %v196_v30 }
  0x27   :  { %309 = vmatpush.msra.mxu0 %v245_v16  ;;  %v185_v35 = vld [vmem:[#allocation5 + $0x28] sm:$0xff]  ;;  %v239_v39 = vld [vmem:[#allocation5 + $0xa0] sm:$0xff]  ;;  %v238_v41 = vld [vmem:[#allocation5 + $0x98] sm:$0xff]  ;;  %253 = vst [vmem:[#allocation1 + $0x1] ss:$4 sm:$0xff] %v212_v33 }
  0x28   :  { %403 = vmatpush.msra.mxu1 %v190_v17  ;;  %553 = vmatpush.msra.mxu2 %v487_v18  ;;  %v184_v40 = vld [vmem:[#allocation5 + $0x20] sm:$0xff]  ;;  %v183_v42 = vld [vmem:[#allocation5 + $0x18] sm:$0xff]  ;;  %v197_v43 = vld [vmem:[#allocation2 + $0x9] sm:$0xff]  ;;  %255 = vst [vmem:[#allocation1 + $0x2] ss:$4 sm:$0xff] %v213_v36 }
  0x29   :  { %310 = vmatpush.msra.mxu0 %v244_v19  ;;  %v480_v44 = vld [vmem:[#allocation5 + $0x110] sm:$0xff]  ;;  %v215_v46 = vrot.slane %v197_v43, 2  ;;  %v216_v47 = vrot.slane %v197_v43, 4  ;;  %v217_v48 = vrot.slane %v197_v43, 6  ;;  %257 = vst [vmem:[#allocation1 + $0x3] ss:$4 sm:$0xff] %v214_v37  ;;  %vm858_vm8 = vmor %vm856_vm6, %vm857_vm7 }
  0x2a   :  { %404 = vmatpush.msra.mxu1 %v189_v20  ;;  %554 = vmatpush.msra.mxu2 %v486_v21  ;;  %v237_v45 = vld [vmem:[#allocation5 + $0x90] sm:$0xff]  ;;  %259 = vst [vmem:[#allocation1 + $0x20] ss:$4 sm:$0xff] %v197_v43  ;;  %v479_v51 = vld [vmem:[#allocation5 + $0x108] sm:$0xff]  ;;  %v478_v52 = vld [vmem:[#allocation5 + $0x100] sm:$0xff] }
  0x2b   :  { %311 = vmatpush.msra.mxu0 %v243_v22  ;;  %v182_v49 = vld [vmem:[#allocation5 + $0x10] sm:$0xff]  ;;  %261 = vst [vmem:[#allocation1 + $0x21] ss:$4 sm:$0xff] %v215_v46  ;;  %v199_v55 = vld [vmem:[#allocation2 + $0x19] sm:$0x3f]  ;;  %v200_v61 = vld [vmem:[#allocation2 + $0x21] sm:$0xff] }
  0x2c   :  { %405 = vmatpush.msra.mxu1 %v188_v23  ;;  %555 = vmatpush.msra.mxu2 %v485_v24  ;;  %v198_v50 = vld [vmem:[#allocation2 + $0x11] sm:$0xff]  ;;  %263 = vst [vmem:[#allocation1 + $0x22] ss:$4 sm:$0xff] %v216_v47  ;;  %v221_v58 = vrot.slane %v199_v55, 2  ;;  %v222_v59 = vrot.slane %v199_v55, 4  ;;  %v223_v62 = vrot.slane %v200_v61, 2  ;;  %vm860_vm10 = vmor %vm858_vm8, %vm859_vm9 }
  0x2d   :  { %312 = vmatpush.msra.mxu0 %v242_v25  ;;  %265 = vst [vmem:[#allocation1 + $0x23] ss:$4 sm:$0xff] %v217_v48  ;;  %v218_v53 = vrot.slane %v198_v50, 2  ;;  %v219_v54 = vrot.slane %v198_v50, 4  ;;  %v220_v56 = vrot.slane %v198_v50, 6  ;;  %v224_v63 = vrot.slane %v200_v61, 4  ;;  %vm1635_vm12 = vmor %vm860_vm10, %vm861_vm11 }
  0x2e   :  { %406 = vmatpush.msra.mxu1 %v187_v26  ;;  %556 = vmatpush.msra.mxu2 %v484_v27  ;;  %v225_v0 = vrot.slane %v200_v61, 6  ;;  %v201_v2 = vld [vmem:[#allocation2 + $0x29] sm:$0xff]  ;;  %v202_v6 = vld [vmem:[#allocation2 + $0x31] sm:$0xff]  ;;  %v203_v12 = vld [vmem:[#allocation2 + $0x39] sm:$0x3f] }
  0x2f   :  { %313 = vmatpush.msra.mxu0 %v241_v28  ;;  %v226_v3 = vrot.slane %v201_v2, 2  ;;  %v227_v4 = vrot.slane %v201_v2, 4  ;;  %v228_v5 = vrot.slane %v201_v2, 6  ;;  %v229_v8 = vrot.slane %v202_v6, 2  ;;  %v142_v16 = vld [vmem:[#allocation2] sm:$0xff]  ;;  %v143_v19 = vld [vmem:[#allocation2 + $0x8] sm:$0xff] }
  0x30   :  { %407 = vmatpush.msra.mxu1 %v186_v29  ;;  %557 = vmatpush.msra.mxu2 %v483_v31  ;;  %v1566_v57 = vld.sshfl [vmem:[#allocation1] sm:$0xff pattern:$0x73625140]  ;;  %v230_v9 = vrot.slane %v202_v6, 4  ;;  %v231_v10 = vrot.slane %v202_v6, 6  ;;  %v232_v13 = vrot.slane %v203_v12, 2 }
  0x31   :  { %314 = vmatpush.msra.mxu0 %v240_v32  ;;  %268 = vst [vmem:[#allocation1] ss:$4 sm:$0xff] %v198_v50  ;;  %v233_v14 = vrot.slane %v203_v12, 4  ;;  %v158_v17 = vrot.slane %v142_v16, 2  ;;  %v159_v18 = vrot.slane %v142_v16, 4  ;;  %v160_v20 = vrot.slane %v142_v16, 6 }
  0x32   :  { %408 = vmatpush.msra.mxu1 %v185_v35  ;;  %558 = vmatpush.msra.mxu2 %v482_v34  ;;  %269 = vst [vmem:[#allocation1 + $0x1] ss:$4 sm:$0xff] %v218_v53  ;;  %v161_v22 = vrot.slane %v143_v19, 2  ;;  %v162_v23 = vrot.slane %v143_v19, 4  ;;  %v163_v25 = vrot.slane %v143_v19, 6  ;;  %v144_v26 = vld [vmem:[#allocation2 + $0x10] sm:$0xff] }
  0x33   :  { %315 = vmatpush.msra.mxu0 %v239_v39  ;;  %270 = vst [vmem:[#allocation1 + $0x2] ss:$4 sm:$0xff] %v219_v54  ;;  %v164_v27 = vrot.slane %v144_v26, 2  ;;  %v165_v28 = vrot.slane %v144_v26, 4  ;;  %v145_v29 = vld [vmem:[#allocation2 + $0x18] sm:$0x3f] }
  0x34   :  { %409 = vmatpush.msra.mxu1 %v184_v40  ;;  %559 = vmatpush.msra.mxu2 %v481_v38  ;;  %271 = vst [vmem:[#allocation1 + $0x3] ss:$4 sm:$0xff] %v220_v56  ;;  %v1568_v60 = vld.sshfl [vmem:[#allocation1 + $0x20] sm:$0xff pattern:$0x73625140]  ;;  %v166_v30 = vrot.slane %v144_v26, 6 }
  0x35   :  { %316 = vmatpush.msra.mxu0 %v238_v41  ;;  %272 = vst [vmem:[#allocation1 + $0x20] ss:$4 sm:$0xff] %v199_v55  ;;  %v167_v32 = vrot.slane %v145_v29, 2  ;;  %v168_v33 = vrot.slane %v145_v29, 4  ;;  %v146_v35 = vld [vmem:[#allocation2 + $0x20] sm:$0xff]  ;;  %v147_v39 = vld [vmem:[#allocation2 + $0x28] sm:$0xff] }
  0x36   :  { %410 = vmatpush.msra.mxu1 %v183_v42  ;;  %560 = vmatpush.msra.mxu2 %v480_v44  ;;  %273 = vst [vmem:[#allocation1 + $0x21] ss:$4 sm:$0xff] %v221_v58  ;;  %v169_v36 = vrot.slane %v146_v35, 2  ;;  %v170_v37 = vrot.slane %v146_v35, 4  ;;  %v171_v38 = vrot.slane %v146_v35, 6  ;;  %v172_v41 = vrot.slane %v147_v39, 2 }
  0x37   :  { %317 = vmatpush.msra.mxu0 %v237_v45  ;;  %274 = vst [vmem:[#allocation1 + $0x22] ss:$4 sm:$0xff] %v222_v59  ;;  %v236_v42 = vld [vmem:[#allocation5 + $0x88] sm:$0xff]  ;;  %v235_v44 = vld [vmem:[#allocation5 + $0x80] sm:$0xff]  ;;  %v173_v45 = vrot.slane %v147_v39, 4  ;;  %v174_v47 = vrot.slane %v147_v39, 6 }
  0x38   :  { %411 = vmatpush.msra.mxu1 %v182_v49  ;;  %561 = vmatpush.msra.mxu2 %v479_v51  ;;  %275 = vst [vmem:[#allocation1 + $0x23] ss:$4 sm:$0xff] %v200_v61  ;;  %v181_v43 = vld [vmem:[#allocation5 + $0x8] sm:$0xff]  ;;  %v180_v46 = vld [vmem:[#allocation5] sm:$0xff]  ;;  %v148_v49 = vld [vmem:[#allocation2 + $0x30] sm:$0xff] }
  0x39   :  { %318 = vmatpush.msra.mxu0 %v236_v42  ;;  %v175_v50 = vrot.slane %v148_v49, 2  ;;  %v176_v51 = vrot.slane %v148_v49, 4  ;;  %v149_v53 = vld [vmem:[#allocation2 + $0x38] sm:$0x3f] }
  0x3a   :  { %562 = vmatpush.msra.mxu2 %v478_v52  ;;  %412 = vmatpush.msra.mxu1 %v181_v43  ;;  %v177_v52 = vrot.slane %v148_v49, 6  ;;  %v178_v55 = vrot.slane %v149_v53, 2  ;;  %v179_v56 = vrot.slane %v149_v53, 4 }
  0x3b   :  { %v1570_v1 = vld.sshfl [vmem:[#allocation1] sm:$0xff pattern:$0x73625140]  ;;  %319 = vmatpush.msra.mxu0 %v235_v44 }
  0x3c   :  { %278 = vst [vmem:[#allocation1] ss:$4 sm:$0xff] %v223_v62  ;;  %413 = vmatpush.msra.mxu1 %v180_v46  ;;  %320 = vmatmul.f32.vlgmr.msra.gmra.mxu0 %v1566_v57  ;;  %v439_v57 = vld [vmem:[#allocation2 + $0x2] sm:$0xff]  ;;  %v440_v62 = vld [vmem:[#allocation2 + $0xa] sm:$0xff] }
  0x3d   :  { %279 = vst [vmem:[#allocation1 + $0x1] ss:$4 sm:$0xff] %v224_v63  ;;  %v455_v59 = vrot.slane %v439_v57, 2  ;;  %v456_v61 = vrot.slane %v439_v57, 4 }
  0x3e   :  { %280 = vst [vmem:[#allocation1 + $0x2] ss:$4 sm:$0xff] %v225_v0  ;;  %v457_v0 = vrot.slane %v439_v57, 6 }
  0x3f   :  { %281 = vst [vmem:[#allocation1 + $0x3] ss:$4 sm:$0xff] %v201_v2  ;;  %v1572_v7 = vld.sshfl [vmem:[#allocation1 + $0x20] sm:$0xff pattern:$0x73625140] }
  0x40   :  { %282 = vst [vmem:[#allocation1 + $0x20] ss:$4 sm:$0xff] %v226_v3  ;;  %v459_v3 = vrot.slane %v440_v62, 4 }
  0x41   :  { %283 = vst [vmem:[#allocation1 + $0x21] ss:$4 sm:$0xff] %v227_v4  ;;  %v460_v4 = vrot.slane %v440_v62, 6 }
  0x42   :  { %284 = vst [vmem:[#allocation1 + $0x22] ss:$4 sm:$0xff] %v228_v5  ;;  %v441_v5 = vld [vmem:[#allocation2 + $0x12] sm:$0xff] }
  0x43   :  { %285 = vst [vmem:[#allocation1 + $0x23] ss:$4 sm:$0xff] %v202_v6  ;;  %v461_v6 = vrot.slane %v441_v5, 2 }
  0x44   :  { %323 = vmatmul.f32.gmra.mxu0 %v1568_v60  ;;  %v458_v60 = vrot.slane %v440_v62, 2 }
  0x46   :  { %v1574_v11 = vld.sshfl [vmem:[#allocation1] sm:$0xff pattern:$0x73625140] }
  0x47   :  { %288 = vst [vmem:[#allocation1] ss:$4 sm:$0xff] %v229_v8  ;;  %v442_v8 = vld [vmem:[#allocation2 + $0x1a] sm:$0x3f] }
  0x48   :  { %289 = vst [vmem:[#allocation1 + $0x1] ss:$4 sm:$0xff] %v230_v9 }
  0x49   :  { %290 = vst [vmem:[#allocation1 + $0x2] ss:$4 sm:$0xff] %v231_v10  ;;  %v463_v10 = vrot.slane %v441_v5, 6 }
  0x4a   :  { %291 = vst [vmem:[#allocation1 + $0x3] ss:$4 sm:$0xff] %v203_v12  ;;  %v1576_v15 = vld.sshfl [vmem:[#allocation1 + $0x20] sm:$0xff pattern:$0x73625140]  ;;  %v464_v12 = vrot.slane %v442_v8, 2 }
  0x4b   :  { %292 = vst [vmem:[#allocation1 + $0x20] ss:$4 sm:$0xff] %v232_v13  ;;  %v465_v13 = vrot.slane %v442_v8, 4 }
  0x4c   :  { %293 = vst [vmem:[#allocation1 + $0x21] ss:$4 sm:$0xff] %v233_v14  ;;  %326 = vmatmul.f32.gmra.mxu0 %v1570_v1  ;;  %v462_v1 = vrot.slane %v441_v5, 4 }
  0x51   :  { %v1578_v21 = vld.sshfl [vmem:[#allocation1] sm:$0xff pattern:$0x73625140] }
  0x52   :  { %345 = vst [vmem:[#allocation1] ss:$4 sm:$0xff] %v142_v16  ;;  %v443_v16 = vld [vmem:[#allocation2 + $0x22] sm:$0xff] }
  0x53   :  { %347 = vst [vmem:[#allocation1 + $0x1] ss:$4 sm:$0xff] %v158_v17  ;;  %v1580_v24 = vld.sshfl [vmem:[#allocation1 + $0x20] sm:$0xff pattern:$0x73625140]  ;;  %v467_v17 = vrot.slane %v443_v16, 4 }
  0x54   :  { %349 = vst [vmem:[#allocation1 + $0x2] ss:$4 sm:$0xff] %v159_v18  ;;  %329 = vmatmul.f32.gmra.mxu0 %v1572_v7  ;;  %v466_v7 = vrot.slane %v443_v16, 2  ;;  %v468_v18 = vrot.slane %v443_v16, 6 }
  0x55   :  { %351 = vst [vmem:[#allocation1 + $0x3] ss:$4 sm:$0xff] %v160_v20  ;;  %v444_v20 = vld [vmem:[#allocation2 + $0x2a] sm:$0xff] }
  0x56   :  { %353 = vst [vmem:[#allocation1 + $0x20] ss:$4 sm:$0xff] %v143_v19 }
  0x57   :  { %355 = vst [vmem:[#allocation1 + $0x21] ss:$4 sm:$0xff] %v161_v22  ;;  %v469_v22 = vrot.slane %v444_v20, 2 }
  0x58   :  { %357 = vst [vmem:[#allocation1 + $0x22] ss:$4 sm:$0xff] %v162_v23  ;;  %v470_v23 = vrot.slane %v444_v20, 4 }
  0x59   :  { %359 = vst [vmem:[#allocation1 + $0x23] ss:$4 sm:$0xff] %v163_v25  ;;  %v471_v25 = vrot.slane %v444_v20, 6 }
  0x5c   :  { %v360_v31 = vld.sshfl [vmem:[#allocation1] sm:$0xff pattern:$0x73625140]  ;;  %332 = vmatmul.f32.gmra.mxu0 %v1574_v11 }
  0x5d   :  { %362 = vst [vmem:[#allocation1] ss:$4 sm:$0xff] %v144_v26  ;;  %414 = vmatmul.f32.vlgmr.msra.gmra.mxu1 %v360_v31  ;;  %v445_v26 = vld [vmem:[#allocation2 + $0x32] sm:$0xff] }
  0x5e   :  { %363 = vst [vmem:[#allocation1 + $0x1] ss:$4 sm:$0xff] %v164_v27  ;;  %v472_v27 = vrot.slane %v445_v26, 2 }
  0x5f   :  { %364 = vst [vmem:[#allocation1 + $0x2] ss:$4 sm:$0xff] %v165_v28  ;;  %v473_v28 = vrot.slane %v445_v26, 4 }
  0x60   :  { %365 = vst [vmem:[#allocation1 + $0x3] ss:$4 sm:$0xff] %v166_v30  ;;  %v361_v34 = vld.sshfl [vmem:[#allocation1 + $0x20] sm:$0xff pattern:$0x73625140] }
  0x61   :  { %366 = vst [vmem:[#allocation1 + $0x20] ss:$4 sm:$0xff] %v145_v29  ;;  %v474_v29 = vrot.slane %v445_v26, 6 }
  0x62   :  { %367 = vst [vmem:[#allocation1 + $0x21] ss:$4 sm:$0xff] %v167_v32 }
  0x63   :  { %368 = vst [vmem:[#allocation1 + $0x22] ss:$4 sm:$0xff] %v168_v33 }
  0x64   :  { %369 = vst [vmem:[#allocation1 + $0x23] ss:$4 sm:$0xff] %v146_v35  ;;  %335 = vmatmul.f32.gmra.mxu0 %v1576_v15  ;;  %v446_v15 = vld [vmem:[#allocation2 + $0x3a] sm:$0x3f] }
  0x65   :  { %417 = vmatmul.f32.gmra.mxu1 %v361_v34  ;;  %v475_v31 = vrot.slane %v446_v15, 2  ;;  %v476_v32 = vrot.slane %v446_v15, 4 }
  0x67   :  { %v370_v40 = vld.sshfl [vmem:[#allocation1] sm:$0xff pattern:$0x73625140] }
  0x68   :  { %372 = vst [vmem:[#allocation1] ss:$4 sm:$0xff] %v169_v36 }
  0x69   :  { %373 = vst [vmem:[#allocation1 + $0x1] ss:$4 sm:$0xff] %v170_v37 }
  0x6a   :  { %374 = vst [vmem:[#allocation1 + $0x2] ss:$4 sm:$0xff] %v171_v38 }
  0x6b   :  { %375 = vst [vmem:[#allocation1 + $0x3] ss:$4 sm:$0xff] %v147_v39  ;;  %v371_v48 = vld.sshfl [vmem:[#allocation1 + $0x20] sm:$0xff pattern:$0x73625140] }
  0x6c   :  { %376 = vst [vmem:[#allocation1 + $0x20] ss:$4 sm:$0xff] %v172_v41  ;;  %338 = vmatmul.f32.gmra.mxu0 %v1578_v21 }
  0x6d   :  { %377 = vst [vmem:[#allocation1 + $0x21] ss:$4 sm:$0xff] %v173_v45  ;;  %420 = vmatmul.f32.gmra.mxu1 %v370_v40 }
  0x6e   :  { %378 = vst [vmem:[#allocation1 + $0x22] ss:$4 sm:$0xff] %v174_v47 }
  0x6f   :  { %379 = vst [vmem:[#allocation1 + $0x23] ss:$4 sm:$0xff] %v148_v49 }
  0x72   :  { %v380_v54 = vld.sshfl [vmem:[#allocation1] sm:$0xff pattern:$0x73625140] }
  0x73   :  { %382 = vst [vmem:[#allocation1] ss:$4 sm:$0xff] %v175_v50 }
  0x74   :  { %383 = vst [vmem:[#allocation1 + $0x1] ss:$4 sm:$0xff] %v176_v51  ;;  %341 = vmatmul.f32.gmra.mxu0 %v1580_v24 }
  0x75   :  { %384 = vst [vmem:[#allocation1 + $0x2] ss:$4 sm:$0xff] %v177_v52  ;;  %423 = vmatmul.f32.gmra.mxu1 %v371_v48 }
  0x76   :  { %385 = vst [vmem:[#allocation1 + $0x3] ss:$4 sm:$0xff] %v149_v53  ;;  %v381_v58 = vld.sshfl [vmem:[#allocation1 + $0x20] sm:$0xff pattern:$0x73625140] }
  0x77   :  { %386 = vst [vmem:[#allocation1 + $0x20] ss:$4 sm:$0xff] %v178_v55 }
  0x78   :  { %387 = vst [vmem:[#allocation1 + $0x21] ss:$4 sm:$0xff] %v179_v56 }
  0x7d   :  { %v1584_v63 = vld.sshfl [vmem:[#allocation1] sm:$0xff pattern:$0x73625140]  ;;  %426 = vmatmul.f32.gmra.mxu1 %v380_v54 }
  0x7e   :  { %494 = vst [vmem:[#allocation1] ss:$4 sm:$0xff] %v439_v57 }
  0x7f   :  { %496 = vst [vmem:[#allocation1 + $0x1] ss:$4 sm:$0xff] %v455_v59  ;;  %v1587_v2 = vld.sshfl [vmem:[#allocation1 + $0x20] sm:$0xff pattern:$0x73625140] }
  0x80   :  { %498 = vst [vmem:[#allocation1 + $0x2] ss:$4 sm:$0xff] %v456_v61  ;;  %v1252_v61 = vld [vmem:[%s1689_s2] ss:$0 sm:$0xff] }
  0x81   :  { %500 = vst [vmem:[#allocation1 + $0x3] ss:$4 sm:$0xff] %v457_v0 }
  0x82   :  { %502 = vst [vmem:[#allocation1 + $0x20] ss:$4 sm:$0xff] %v440_v62 }
  0x83   :  { %504 = vst [vmem:[#allocation1 + $0x21] ss:$4 sm:$0xff] %v458_v60 }
  0x84   :  { %506 = vst [vmem:[#allocation1 + $0x22] ss:$4 sm:$0xff] %v459_v3 }
  0x85   :  { %508 = vst [vmem:[#allocation1 + $0x23] ss:$4 sm:$0xff] %v460_v4  ;;  %429 = vmatmul.f32.gmra.mxu1 %v381_v58 }
  0x88   :  { %v509_v9 = vld.sshfl [vmem:[#allocation1] sm:$0xff pattern:$0x73625140] }
  0x89   :  { %563 = vmatmul.f32.vlgmr.msra.gmra.mxu2 %v509_v9  ;;  %511 = vst [vmem:[#allocation1] ss:$4 sm:$0xff] %v441_v5 }
  0x8a   :  { %512 = vst [vmem:[#allocation1 + $0x1] ss:$4 sm:$0xff] %v461_v6 }
  0x8b   :  { %513 = vst [vmem:[#allocation1 + $0x2] ss:$4 sm:$0xff] %v462_v1 }
  0x8c   :  { %v510_v14 = vld.sshfl [vmem:[#allocation1 + $0x20] sm:$0xff pattern:$0x73625140]  ;;  %514 = vst [vmem:[#allocation1 + $0x3] ss:$4 sm:$0xff] %v463_v10 }
  0x8d   :  { %515 = vst [vmem:[#allocation1 + $0x20] ss:$4 sm:$0xff] %v442_v8  ;;  %432 = vmatmul.f32.gmra.mxu1 %v1584_v63  ;;  %v1452_v8 = vmov 60.0  }
  0x8e   :  { %516 = vst [vmem:[#allocation1 + $0x21] ss:$4 sm:$0xff] %v464_v12  ;;  %1258 = vrcp.f32 %v1452_v8 }
  0x8f   :  { %517 = vst [vmem:[#allocation1 + $0x22] ss:$4 sm:$0xff] %v465_v13 }
  0x90   :  { %518 = vst [vmem:[#allocation1 + $0x23] ss:$4 sm:$0xff] %v443_v16 }
  0x91   :  { %566 = vmatmul.f32.gmra.mxu2 %v510_v14 }
  0x93   :  { %v519_v19 = vld.sshfl [vmem:[#allocation1] sm:$0xff pattern:$0x73625140] }
  0x94   :  { %521 = vst [vmem:[#allocation1] ss:$4 sm:$0xff] %v466_v7 }
  0x95   :  { %522 = vst [vmem:[#allocation1 + $0x1] ss:$4 sm:$0xff] %v467_v17  ;;  %435 = vmatmul.f32.gmra.mxu1 %v1587_v2 }
  0x96   :  { %523 = vst [vmem:[#allocation1 + $0x2] ss:$4 sm:$0xff] %v468_v18 }
  0x97   :  { %v520_v11 = vld.sshfl [vmem:[#allocation1 + $0x20] sm:$0xff pattern:$0x73625140]  ;;  %524 = vst [vmem:[#allocation1 + $0x3] ss:$4 sm:$0xff] %v444_v20 }
  0x98   :  { %525 = vst [vmem:[#allocation1 + $0x20] ss:$4 sm:$0xff] %v469_v22 }
  0x99   :  { %569 = vmatmul.f32.gmra.mxu2 %v519_v19  ;;  %526 = vst [vmem:[#allocation1 + $0x21] ss:$4 sm:$0xff] %v470_v23  ;;  %v1259_v19 = vpop.eup %1258 }
  0x9a   :  { %527 = vst [vmem:[#allocation1 + $0x22] ss:$4 sm:$0xff] %v471_v25  ;;  %vm628_vm1 = vweird.f32 %v1259_v19 }
  0x9b   :  { %528 = vst [vmem:[#allocation1 + $0x23] ss:$4 sm:$0xff] %v445_v26 }
  0x9e   :  { %v529_v30 = vld.sshfl [vmem:[#allocation1] sm:$0xff pattern:$0x73625140] }
  0x9f   :  { %531 = vst [vmem:[#allocation1] ss:$4 sm:$0xff] %v472_v27  ;;  %v624_v27 = vmul.f32 60.0, %v1259_v19 }
  0xa0   :  { %532 = vst [vmem:[#allocation1 + $0x1] ss:$4 sm:$0xff] %v473_v28 }
  0xa1   :  { %572 = vmatmul.f32.gmra.mxu2 %v520_v11  ;;  %533 = vst [vmem:[#allocation1 + $0x2] ss:$4 sm:$0xff] %v474_v29 }
  0xa2   :  { %v530_v33 = vld.sshfl [vmem:[#allocation1 + $0x20] sm:$0xff pattern:$0x73625140]  ;;  %534 = vst [vmem:[#allocation1 + $0x3] ss:$4 sm:$0xff] %v446_v15 }
  0xa3   :  { %535 = vst [vmem:[#allocation1 + $0x20] ss:$4 sm:$0xff] %v475_v31  ;;  %v625_v31 = vsub.f32 1.0, %v624_v27 }
  0xa4   :  { %536 = vst [vmem:[#allocation1 + $0x21] ss:$4 sm:$0xff] %v476_v32 }
  0xa9   :  { %575 = vmatmul.f32.gmra.mxu2 %v529_v30  ;;  %v537_v21 = vld.sshfl [vmem:[#allocation1] sm:$0xff pattern:$0x73625140] }
  0xab   :  { %v538_v34 = vld.sshfl [vmem:[#allocation1 + $0x20] sm:$0xff pattern:$0x73625140] }
  0xb1   :  { %578 = vmatmul.f32.gmra.mxu2 %v530_v33 }
  0xb9   :  { %581 = vmatmul.f32.gmra.mxu2 %v537_v21  ;;  %v321_v35 = vpop.f32.mrf.mxu0  ;;  %v626_v21 = vmul.f32 %v1259_v19, %v625_v31 }
  0xc1   :  { %584 = vmatmul.f32.gmra.mxu2 %v538_v34  ;;  %v324_v37 = vpop.f32.mrf.mxu0 }
  0xc9   :  { %v327_v39 = vpop.f32.mrf.mxu0 }
  0xd1   :  { %v330_v43 = vpop.f32.mrf.mxu0 }
  0xd9   :  { %v333_v24 = vpop.f32.mrf.mxu0 }
  0xda   :  { %v415_v36 = vpop.f32.mrf.mxu1 }
  0xdb   :  { %v416_v52 = vadd.f32 %v415_v36, %v321_v35  ;;  %v627_v36 = vadd.f32 %v1259_v19, %v626_v21 }
  0xe1   :  { %v336_v48 = vpop.f32.mrf.mxu0 }
  0xe2   :  { %v418_v38 = vpop.f32.mrf.mxu1 }
  0xe3   :  { %v419_v51 = vadd.f32 %v418_v38, %v324_v37 }
  0xe9   :  { %v339_v53 = vpop.f32.mrf.mxu0 }
  0xea   :  { %v421_v41 = vpop.f32.mrf.mxu1 }
  0xeb   :  { %v422_v54 = vadd.f32 %v421_v41, %v327_v39  ;;  %v629_v39 = vsel %vm628_vm1, %v1259_v19, %v627_v36  ;;  %vm1142_vm1 = vcmask 1041409  }
  0xf1   :  { %v342_v13 = vpop.f32.mrf.mxu0 }
  0xf2   :  { %v424_v44 = vpop.f32.mrf.mxu1 }
  0xf3   :  { %v425_v57 = vadd.f32 %v424_v44, %v330_v43 }
  0xfa   :  { %v427_v46 = vpop.f32.mrf.mxu1 }
  0xfb   :  { %v428_v63 = vadd.f32 %v427_v46, %v333_v24 }
 0x102   :  { %v430_v49 = vpop.f32.mrf.mxu1 }
 0x103   :  { %v431_v60 = vadd.f32 %v430_v49, %v336_v48 }
 0x10a   :  { %v433_v56 = vpop.f32.mrf.mxu1 }
 0x10b   :  { %v434_v6 = vadd.f32 %v433_v56, %v339_v53 }
 0x10c   :  { %v564_v40 = vpop.f32.mrf.mxu2 }
 0x10d   :  { %v588_v59 = vadd.f32 %v564_v40, %v416_v52 }
 0x10f   :  { %v600_v3 = vadd.f32 %v1252_v61, %v588_v59 }
 0x112   :  { %v436_v14 = vpop.f32.mrf.mxu1 }
 0x113   :  { %v437_v18 = vadd.f32 %v436_v14, %v342_v13 }
 0x114   :  { %v567_v42 = vpop.f32.mrf.mxu2 }
 0x115   :  { %v589_v58 = vadd.f32 %v567_v42, %v419_v51 }
 0x117   :  { %v601_v0 = vadd.f32 %v1252_v61, %v589_v58 }
 0x119   :  { %v608_v9 = vadd.f32 %v601_v0, %v600_v3 }
 0x11c   :  { %v570_v45 = vpop.f32.mrf.mxu2 }
 0x11d   :  { %v590_v62 = vadd.f32 %v570_v45, %v422_v54 }
 0x11f   :  { %v602_v4 = vadd.f32 %v1252_v61, %v590_v62 }
 0x121   :  { %v609_v16 = vadd.f32 %v608_v9, %v602_v4 }
 0x124   :  { %v573_v47 = vpop.f32.mrf.mxu2 }
 0x125   :  { %v591_v2 = vadd.f32 %v573_v47, %v425_v57 }
 0x127   :  { %v603_v10 = vadd.f32 %v1252_v61, %v591_v2 }
 0x129   :  { %v610_v20 = vadd.f32 %v609_v16, %v603_v10 }
 0x12c   :  { %v576_v50 = vpop.f32.mrf.mxu2 }
 0x12d   :  { %v592_v5 = vadd.f32 %v576_v50, %v428_v63 }
 0x12f   :  { %v604_v7 = vadd.f32 %v1252_v61, %v592_v5 }
 0x131   :  { %v611_v23 = vadd.f32 %v610_v20, %v604_v7 }
 0x134   :  { %v579_v55 = vpop.f32.mrf.mxu2 }
 0x135   :  { %v593_v12 = vadd.f32 %v579_v55, %v431_v60 }
 0x137   :  { %v605_v22 = vadd.f32 %v1252_v61, %v593_v12 }
 0x139   :  { %v612_v28 = vadd.f32 %v611_v23, %v605_v22 }
 0x13c   :  { %v582_v1 = vpop.f32.mrf.mxu2 }
 0x13d   :  { %v594_v17 = vadd.f32 %v582_v1, %v434_v6 }
 0x13f   :  { %v606_v25 = vadd.f32 %v1252_v61, %v594_v17  ;;  %v673_v17 = vld [vmem:[%s1690_s3] sm:$0x1] }
 0x141   :  { %v613_v30 = vadd.f32 %v612_v28, %v606_v25 }
 0x144   :  { %v585_v11 = vpop.f32.mrf.mxu2 }
 0x145   :  { %v595_v26 = vadd.f32 %v585_v11, %v437_v18 }
 0x147   :  { %v607_v29 = vadd.f32 %v1252_v61, %v595_v26 }
 0x149   :  { %v615_v15 = vsel %vm614_vm0, %v607_v29, 0.0 }
 0x14a   :  { %v616_v32 = vadd.f32 %v615_v15, %v613_v30 }
 0x14c   :  { %v617_v33 = vrot.slane %v616_v32, 4 }
 0x14e   :  { %v618_v34 = vadd.f32 %v617_v33, %v616_v32 }
 0x150   :  { %v619_v35 = vrot.slane %v618_v34, 2 }
 0x152   :  { %v620_v37 = vadd.f32 %v619_v35, %v618_v34 }
 0x154   :  { %v621_v38 = vrot.slane %v620_v37, 1 }
 0x156   :  { %v622_v40 = vadd.f32 %v621_v38, %v620_v37 }
 0x158   :  { %v630_v41 = vmul.f32 %v629_v39, %v622_v40 }
 0x15a   :  { %v1600_v42 = vsub.f32 %v600_v3, %v630_v41  ;;  %v632_v43 = vsub.f32 %v601_v0, %v630_v41  ;;  %v633_v44 = vsub.f32 %v602_v4, %v630_v41  ;;  %v634_v45 = vsub.f32 %v603_v10, %v630_v41 }
 0x15b   :  { %v635_v47 = vsub.f32 %v604_v7, %v630_v41  ;;  %v636_v50 = vsub.f32 %v605_v22, %v630_v41  ;;  %v638_v53 = vsub.f32 %v607_v29, %v630_v41  ;;  %v637_v54 = vsub.f32 %v606_v25, %v630_v41  ;;  %v1253_v22 = vld [vmem:[%s1691_s4] ss:$0 sm:$0xff] }
 0x15c   :  { %v639_v24 = vmul.f32 %v1600_v42, %v1600_v42  ;;  %v640_v46 = vmul.f32 %v632_v43, %v632_v43  ;;  %v641_v48 = vmul.f32 %v633_v44, %v633_v44  ;;  %v642_v51 = vmul.f32 %v634_v45, %v634_v45 }
 0x15d   :  { %v643_v55 = vmul.f32 %v635_v47, %v635_v47  ;;  %v644_v58 = vmul.f32 %v636_v50, %v636_v50  ;;  %v646_v59 = vmul.f32 %v638_v53, %v638_v53  ;;  %v645_v61 = vmul.f32 %v637_v54, %v637_v54 }
 0x15e   :  { %v647_v49 = vadd.f32 %v640_v46, %v639_v24 }
 0x15f   :  { %v653_v0 = vsel %vm614_vm0, %v646_v59, 0.0  ;;  %v854_v59 = vld [vmem:[#allocation7 + $0x70] sm:$0xff] }
 0x160   :  { %v648_v52 = vadd.f32 %v647_v49, %v641_v48  ;;  %v748_v48 = vld [vmem:[#allocation11 + $0x20] sm:$0xff]  ;;  %v749_v49 = vld [vmem:[#allocation11 + $0x28] sm:$0xf] }
 0x162   :  { %v649_v56 = vadd.f32 %v648_v52, %v642_v51  ;;  %v790_v51 = vld [vmem:[#allocation11 + $0x38] sm:$0xff]  ;;  %v791_v52 = vld [vmem:[#allocation11 + $0x40] sm:$0xf] }
 0x164   :  { %v650_v57 = vadd.f32 %v649_v56, %v643_v55  ;;  %v855_v55 = vld [vmem:[#allocation7 + $0x78] sm:$0xff]  ;;  %v1005_v56 = vld [vmem:[#allocation7 + $0x170] sm:$0xff] }
 0x165   :  { %967 = vmatpush.msrb.mxu1 %v855_v55 }
 0x166   :  { %v651_v62 = vadd.f32 %v650_v57, %v644_v58  ;;  %v904_v57 = vld [vmem:[#allocation7 + $0xf0] sm:$0xff] }
 0x167   :  { %968 = vmatpush.msrb.mxu1 %v854_v59 }
 0x168   :  { %v652_v63 = vadd.f32 %v651_v62, %v645_v61  ;;  %v1004_v61 = vld [vmem:[#allocation7 + $0x168] sm:$0xff] }
 0x169   :  { %v903_v62 = vld [vmem:[#allocation7 + $0xe8] sm:$0xff] }
 0x16a   :  { %v654_v2 = vadd.f32 %v653_v0, %v652_v63  ;;  %v853_v63 = vld [vmem:[#allocation7 + $0x68] sm:$0xff]  ;;  %v1003_v0 = vld [vmem:[#allocation7 + $0x160] sm:$0xff] }
 0x16b   :  { %969 = vmatpush.msrb.mxu1 %v853_v63 }
 0x16c   :  { %v655_v60 = vrot.slane %v654_v2, 4 }
 0x16e   :  { %v656_v3 = vadd.f32 %v655_v60, %v654_v2  ;;  %v902_v60 = vld [vmem:[#allocation7 + $0xe0] sm:$0xff] }
 0x170   :  { %v657_v4 = vrot.slane %v656_v3, 2 }
 0x172   :  { %v658_v5 = vadd.f32 %v657_v4, %v656_v3  ;;  %v852_v3 = vld [vmem:[#allocation7 + $0x60] sm:$0xff]  ;;  %v1002_v4 = vld [vmem:[#allocation7 + $0x158] sm:$0xff] }
 0x173   :  { %970 = vmatpush.msrb.mxu1 %v852_v3 }
 0x174   :  { %v659_v6 = vrot.slane %v658_v5, 1 }
 0x176   :  { %v660_v1 = vadd.f32 %v659_v6, %v658_v5  ;;  %v901_v5 = vld [vmem:[#allocation7 + $0xd8] sm:$0xff] }
 0x177   :  { %v851_v6 = vld [vmem:[#allocation7 + $0x58] sm:$0xff] }
 0x178   :  { %v661_v8 = vmul.f32 %v660_v1, %v629_v39  ;;  %v1001_v1 = vld [vmem:[#allocation7 + $0x150] sm:$0xff]  ;;  %971 = vmatpush.msrb.mxu1 %v851_v6 }
 0x17a   :  { %v662_v9 = vadd.f32 1e-05, %v661_v8 }
 0x17c   :  { %1260 = vrsqrt.f32 %v662_v9  ;;  %vm669_vm3 = vweird.f32 %v662_v9 }
 0x182   :  { %v1261_v10 = vpop.eup %1260 }
 0x183   :  { %v664_v12 = vmul.f32 %v1261_v10, %v662_v9  ;;  %vm670_vm2 = vweird.f32 %v1261_v10  ;;  %v900_v9 = vld [vmem:[#allocation7 + $0xd0] sm:$0xff] }
 0x184   :  { %vm671_vm4 = vmor %vm669_vm3, %vm670_vm2 }
 0x185   :  { %v665_v13 = vmul.f32 %v1261_v10, %v664_v12  ;;  %v898_v12 = vld [vmem:[#allocation7 + $0xc0] sm:$0xff] }
 0x187   :  { %v666_v14 = vmul.f32 0.5, %v665_v13  ;;  %v897_v13 = vld [vmem:[#allocation7 + $0xb8] sm:$0xff] }
 0x189   :  { %v667_v16 = vsub.f32 1.5, %v666_v14 }
 0x18b   :  { %v668_v7 = vmul.f32 %v1261_v10, %v667_v16  ;;  %v850_v16 = vld [vmem:[#allocation7 + $0x50] sm:$0xff] }
 0x18c   :  { %972 = vmatpush.msrb.mxu1 %v850_v16 }
 0x18d   :  { %v672_v18 = vsel %vm671_vm4, %v1261_v10, %v668_v7  ;;  %v899_v10 = vld [vmem:[#allocation7 + $0xc8] sm:$0xff]  ;;  %v896_v7 = vld [vmem:[#allocation7 + $0xb0] sm:$0xff] }
 0x18e   :  { %v674_v19 = vmul.f32 %v673_v17, %v672_v18  ;;  %v1000_v17 = vld [vmem:[#allocation7 + $0x148] sm:$0xff] }
 0x18f   :  { %v849_v18 = vld [vmem:[#allocation7 + $0x48] sm:$0xff] }
 0x190   :  { %v675_v20 = vperm.slane %v674_v19, 0  ;;  %v999_v19 = vld [vmem:[#allocation7 + $0x140] sm:$0xff]  ;;  %973 = vmatpush.msrb.mxu1 %v849_v18 }
 0x192   :  { %v683_v23 = vmul.f32 %v675_v20, %v638_v53  ;;  %v682_v25 = vmul.f32 %v675_v20, %v637_v54  ;;  %v681_v11 = vmul.f32 %v675_v20, %v636_v50  ;;  %v680_v28 = vmul.f32 %v675_v20, %v635_v47  ;;  %v747_v47 = vld [vmem:[#allocation11 + $0x18] sm:$0xff]  ;;  %v789_v50 = vld [vmem:[#allocation11 + $0x30] sm:$0xff] }
 0x193   :  { %v679_v15 = vmul.f32 %v675_v20, %v634_v45  ;;  %v678_v33 = vmul.f32 %v675_v20, %v633_v44  ;;  %v677_v35 = vmul.f32 %v675_v20, %v632_v43  ;;  %v676_v38 = vmul.f32 %v675_v20, %v1600_v42  ;;  %v704_v44 = vld [vmem:[#allocation11] sm:$0xff]  ;;  %v705_v42 = vld [vmem:[#allocation11 + $0x8] sm:$0xff]  ;;  %v706_v43 = vld [vmem:[#allocation11 + $0x10] sm:$0xf] }
 0x194   :  { %v695_v26 = vadd.f32 %v1253_v22, %v683_v23  ;;  %v694_v27 = vadd.f32 %v1253_v22, %v682_v25  ;;  %v693_v30 = vadd.f32 %v1253_v22, %v681_v11  ;;  %v692_v32 = vadd.f32 %v1253_v22, %v680_v28  ;;  %v1006_v53 = vld [vmem:[#allocation7 + $0x178] sm:$0xff]  ;;  %v895_v20 = vld [vmem:[#allocation7 + $0xa8] sm:$0xff]  ;;  %v894_v23 = vld [vmem:[#allocation7 + $0xa0] sm:$0xff] }
 0x195   :  { %v691_v34 = vadd.f32 %v1253_v22, %v679_v15  ;;  %v690_v37 = vadd.f32 %v1253_v22, %v678_v33  ;;  %v689_v40 = vadd.f32 %v1253_v22, %v677_v35  ;;  %v688_v45 = vadd.f32 %v1253_v22, %v676_v38  ;;  %v905_v54 = vld [vmem:[#allocation7 + $0xf8] sm:$0xff]  ;;  %1026 = vmatpush.msrb.mxu2 %v1006_v53  ;;  %v848_v22 = vld [vmem:[#allocation7 + $0x40] sm:$0xff]  ;;  %v892_v28 = vld [vmem:[#allocation7 + $0x90] sm:$0xff] }
 0x196   :  { %v703_v29 = vmax.f32 %v695_v26, 0.0  ;;  %v702_v31 = vmax.f32 %v694_v27, 0.0  ;;  %v701_v21 = vmax.f32 %v693_v30, 0.0  ;;  %v700_v36 = vmax.f32 %v692_v32, 0.0  ;;  %925 = vmatpush.msrb.mxu0 %v905_v54  ;;  %974 = vmatpush.msrb.mxu1 %v848_v22  ;;  %v847_v25 = vld [vmem:[#allocation7 + $0x38] sm:$0xff]  ;;  %v846_v27 = vld [vmem:[#allocation7 + $0x30] sm:$0xff] }
 0x197   :  { %v699_v39 = vmax.f32 %v691_v34, 0.0  ;;  %v698_v41 = vmax.f32 %v690_v37, 0.0  ;;  %v697_v24 = vmax.f32 %v689_v40, 0.0  ;;  %v696_v46 = vmax.f32 %v688_v45, 0.0  ;;  %1027 = vmatpush.msrb.mxu2 %v1005_v56  ;;  %v893_v11 = vld [vmem:[#allocation7 + $0x98] sm:$0xff]  ;;  %v997_v30 = vld [vmem:[#allocation7 + $0x130] sm:$0xff] }
 0x198   :  { %1227 = vmatpush.msk.msra.mxu3 %vm614_vm0, %v703_v29  ;;  %926 = vmatpush.msrb.mxu0 %v904_v57  ;;  %v891_v15 = vld [vmem:[#allocation7 + $0x88] sm:$0xff]  ;;  %v890_v32 = vld [vmem:[#allocation7 + $0x80] sm:$0xff]  ;;  %v994_v37 = vld [vmem:[#allocation7 + $0x118] sm:$0xff] }
 0x199   :  { %1028 = vmatpush.msrb.mxu2 %v1004_v61  ;;  %975 = vmatpush.msrb.mxu1 %v847_v25  ;;  %v844_v33 = vld [vmem:[#allocation7 + $0x20] sm:$0xff]  ;;  %v996_v34 = vld [vmem:[#allocation7 + $0x128] sm:$0xff]  ;;  %v842_v38 = vld [vmem:[#allocation7 + $0x10] sm:$0xff] }
 0x19a   :  { %729 = vmatpush.msra.mxu3 %v702_v31  ;;  %927 = vmatpush.msrb.mxu0 %v903_v62  ;;  %v995_v35 = vld [vmem:[#allocation7 + $0x120] sm:$0xff]  ;;  %v841_v40 = vld [vmem:[#allocation7 + $0x8] sm:$0xff] }
 0x19b   :  { %1029 = vmatpush.msrb.mxu2 %v1003_v0  ;;  %976 = vmatpush.msrb.mxu1 %v846_v27  ;;  %v840_v45 = vld [vmem:[#allocation7] sm:$0xff]  ;;  %v992_v56 = vld [vmem:[#allocation7 + $0x108] sm:$0xff] }
 0x19c   :  { %730 = vmatpush.msra.mxu3 %v701_v21  ;;  %928 = vmatpush.msrb.mxu0 %v902_v60 }
 0x19d   :  { %1030 = vmatpush.msrb.mxu2 %v1002_v4 }
 0x19e   :  { %731 = vmatpush.msra.mxu3 %v700_v36  ;;  %929 = vmatpush.msrb.mxu0 %v901_v5 }
 0x19f   :  { %1031 = vmatpush.msrb.mxu2 %v1001_v1 }
 0x1a0   :  { %732 = vmatpush.msra.mxu3 %v699_v39  ;;  %930 = vmatpush.msrb.mxu0 %v900_v9 }
 0x1a1   :  { %1032 = vmatpush.msrb.mxu2 %v1000_v17 }
 0x1a2   :  { %733 = vmatpush.msra.mxu3 %v698_v41  ;;  %931 = vmatpush.msrb.mxu0 %v899_v10 }
 0x1a3   :  { %1033 = vmatpush.msrb.mxu2 %v999_v19 }
 0x1a4   :  { %734 = vmatpush.msra.mxu3 %v697_v24  ;;  %932 = vmatpush.msrb.mxu0 %v898_v12 }
 0x1a6   :  { %735 = vmatpush.msra.mxu3 %v696_v46  ;;  %933 = vmatpush.msrb.mxu0 %v897_v13 }
 0x1a7   :  { %1228 = vmatmul.msk.f32.vlgmr.msra.gmra.mxu3 %vm707_vm5, %v704_v44 }
 0x1a8   :  { %1231 = vmatpush.msk.msrb.mxu3 %vm614_vm0, %v703_v29  ;;  %934 = vmatpush.msrb.mxu0 %v896_v7 }
 0x1aa   :  { %768 = vmatpush.msrb.mxu3 %v702_v31  ;;  %935 = vmatpush.msrb.mxu0 %v895_v20 }
 0x1ac   :  { %769 = vmatpush.msrb.mxu3 %v701_v21  ;;  %936 = vmatpush.msrb.mxu0 %v894_v23 }
 0x1ae   :  { %770 = vmatpush.msrb.mxu3 %v700_v36  ;;  %937 = vmatpush.msrb.mxu0 %v893_v11 }
 0x1af   :  { %1229 = vmatmul.msk.f32.gmra.mxu3 %vm707_vm5, %v705_v42 }
 0x1b0   :  { %771 = vmatpush.msrb.mxu3 %v699_v39  ;;  %938 = vmatpush.msrb.mxu0 %v892_v28 }
 0x1b2   :  { %772 = vmatpush.msrb.mxu3 %v698_v41  ;;  %939 = vmatpush.msrb.mxu0 %v891_v15  ;;  %v1453_v15 = vmov 16.0  }
 0x1b3   :  { %1262 = vrcp.f32 %v1453_v15 }
 0x1b4   :  { %773 = vmatpush.msrb.mxu3 %v697_v24  ;;  %940 = vmatpush.msrb.mxu0 %v890_v32 }
 0x1b6   :  { %774 = vmatpush.msrb.mxu3 %v696_v46 }
 0x1b7   :  { %1230 = vmatmul.msk.f32.gmra.mxu3 %vm707_vm5, %v706_v43 }
 0x1b8   :  { %1235 = vmatpush.msk.msra.mxu3 %vm614_vm0, %v703_v29  ;;  %v998_v29 = vld [vmem:[#allocation7 + $0x138] sm:$0xff] }
 0x1b9   :  { %1034 = vmatpush.msrb.mxu2 %v998_v29 }
 0x1ba   :  { %810 = vmatpush.msra.mxu3 %v702_v31  ;;  %v845_v31 = vld [vmem:[#allocation7 + $0x28] sm:$0xff] }
 0x1bb   :  { %977 = vmatpush.msrb.mxu1 %v845_v31  ;;  %1035 = vmatpush.msrb.mxu2 %v997_v30 }
 0x1bc   :  { %811 = vmatpush.msra.mxu3 %v701_v21 }
 0x1bd   :  { %978 = vmatpush.msrb.mxu1 %v844_v33  ;;  %1036 = vmatpush.msrb.mxu2 %v996_v34  ;;  %v1263_v33 = vpop.eup %1262 }
 0x1be   :  { %812 = vmatpush.msra.mxu3 %v700_v36  ;;  %v843_v36 = vld [vmem:[#allocation7 + $0x18] sm:$0xff]  ;;  %vm1069_vm13 = vweird.f32 %v1263_v33 }
 0x1bf   :  { %1232 = vmatmul.msk.f32.vlgmr.msrb.gmra.mxu3 %vm707_vm5, %v747_v47  ;;  %1037 = vmatpush.msrb.mxu2 %v995_v35 }
 0x1c0   :  { %813 = vmatpush.msra.mxu3 %v699_v39  ;;  %979 = vmatpush.msrb.mxu1 %v843_v36  ;;  %v993_v39 = vld [vmem:[#allocation7 + $0x110] sm:$0xff] }
 0x1c1   :  { %1038 = vmatpush.msrb.mxu2 %v994_v37  ;;  %v1254_v37 = vld [vmem:[%s1693_s6] ss:$0 sm:$0xff] }
 0x1c2   :  { %814 = vmatpush.msra.mxu3 %v698_v41  ;;  %980 = vmatpush.msrb.mxu1 %v842_v38 }
 0x1c3   :  { %1039 = vmatpush.msrb.mxu2 %v993_v39  ;;  %v1065_v39 = vmul.f32 16.0, %v1263_v33 }
 0x1c4   :  { %815 = vmatpush.msra.mxu3 %v697_v24  ;;  %981 = vmatpush.msrb.mxu1 %v841_v40 }
 0x1c5   :  { %1040 = vmatpush.msrb.mxu2 %v992_v56 }
 0x1c6   :  { %816 = vmatpush.msra.mxu3 %v696_v46  ;;  %982 = vmatpush.msrb.mxu1 %v840_v45 }
 0x1c7   :  { %1233 = vmatmul.msk.f32.gmra.mxu3 %vm707_vm5, %v748_v48 }
 0x1cf   :  { %1234 = vmatmul.msk.f32.gmra.mxu3 %vm707_vm5, %v749_v49 }
 0x1d7   :  { %1236 = vmatmul.msk.f32.vlgmr.msra.gmra.mxu3 %vm707_vm5, %v789_v50 }
 0x1df   :  { %1237 = vmatmul.msk.f32.gmra.mxu3 %vm707_vm5, %v790_v51 }
 0x1e7   :  { %1238 = vmatmul.msk.f32.gmra.mxu3 %vm707_vm5, %v791_v52 }
 0x22a   :  { %v1624_v58 = vpop.f32.mrf.mxu3 }
 0x232   :  { %v1626_v2 = vpop.f32.mrf.mxu3 }
 0x23a   :  { %v1628_v8 = vpop.f32.mrf.mxu3 }
 0x242   :  { %v776_v14 = vpop.f32.mrf.mxu3 }
 0x243   :  { %v785_v41 = vmax.f32 %v1624_v58, %v776_v14  ;;  %v991_v58 = vld [vmem:[#allocation7 + $0x100] sm:$0xff] }
 0x244   :  { %1041 = vmatpush.msrb.mxu2 %v991_v58  ;;  %v1134_v58 = vld [vmem:[#allocation8 + $0x70] sm:$0xff] }
 0x24a   :  { %v1630_v26 = vpop.f32.mrf.mxu3 }
 0x24b   :  { %v786_v52 = vmax.f32 %v1626_v2, %v1630_v26 }
 0x252   :  { %v1632_v21 = vpop.f32.mrf.mxu3 }
 0x253   :  { %v787_v1 = vmax.f32 %v1628_v8, %v1632_v21 }
 0x25a   :  { %v818_v24 = vpop.f32.mrf.mxu3 }
 0x25b   :  { %v827_v46 = vmax.f32 %v785_v41, %v818_v24  ;;  %v1066_v24 = vsub.f32 1.0, %v1065_v39 }
 0x25d   :  { %v833_v44 = vrot.slane %v827_v46, 2  ;;  %v834_v42 = vrot.slane %v827_v46, 4  ;;  %v835_v43 = vrot.slane %v827_v46, 6  ;;  %v1239_v48 = vrot.slane %v827_v46, 9 }
 0x25f   :  { %v865_v49 = vrot.slane %v833_v44, 7  ;;  %v868_v50 = vrot.slane %v834_v42, 7  ;;  %v871_v51 = vrot.slane %v835_v43, 7 }
 0x261   :  { %v866_v53 = vsel %vm1635_vm12, %v1239_v48, %v865_v49  ;;  %v867_v54 = vrot.slane %v865_v49, 2  ;;  %v870_v55 = vrot.slane %v868_v50, 2  ;;  %v873_v63 = vrot.slane %v871_v51, 2 }
 0x262   :  { %906 = vst [vmem:[#allocation1] ss:$4 sm:$0xff] %v866_v53  ;;  %v821_v57 = vpop.f32.mrf.mxu3 }
 0x263   :  { %v869_v59 = vsel %vm1635_vm12, %v867_v54, %v868_v50  ;;  %v872_v61 = vsel %vm1635_vm12, %v870_v55, %v871_v51  ;;  %v828_v62 = vmax.f32 %v786_v52, %v821_v57  ;;  %v1135_v54 = vld [vmem:[#allocation8 + $0x78] sm:$0xff] }
 0x264   :  { %908 = vst [vmem:[#allocation1 + $0x1] ss:$4 sm:$0xff] %v869_v59  ;;  %1145 = vmatpush.msrb.mxu3 %v1135_v54 }
 0x265   :  { %910 = vst [vmem:[#allocation1 + $0x2] ss:$4 sm:$0xff] %v872_v61  ;;  %v836_v0 = vrot.slane %v828_v62, 2  ;;  %v837_v2 = vrot.slane %v828_v62, 4  ;;  %v838_v60 = vrot.slane %v828_v62, 6  ;;  %v874_v3 = vrot.slane %v828_v62, 7 }
 0x266   :  { %1146 = vmatpush.msrb.mxu3 %v1134_v58  ;;  %v1133_v61 = vld [vmem:[#allocation8 + $0x68] sm:$0xff] }
 0x267   :  { %v875_v4 = vsel %vm1635_vm12, %v873_v63, %v874_v3  ;;  %v1240_v5 = vrot.slane %v836_v0, 9  ;;  %v878_v6 = vrot.slane %v837_v2, 7  ;;  %v881_v12 = vrot.slane %v838_v60, 7  ;;  %v1132_v63 = vld [vmem:[#allocation8 + $0x60] sm:$0xff]  ;;  %v1130_v3 = vld [vmem:[#allocation8 + $0x50] sm:$0xff] }
 0x268   :  { %912 = vst [vmem:[#allocation1 + $0x3] ss:$4 sm:$0xff] %v875_v4  ;;  %1147 = vmatpush.msrb.mxu3 %v1133_v61 }
 0x269   :  { %v879_v9 = vsel %vm1635_vm12, %v1240_v5, %v878_v6  ;;  %v880_v10 = vrot.slane %v878_v6, 2  ;;  %v883_v17 = vrot.slane %v881_v12, 2  ;;  %v1129_v5 = vld [vmem:[#allocation8 + $0x48] sm:$0xff] }
 0x26a   :  { %914 = vst [vmem:[#allocation1 + $0x20] ss:$4 sm:$0xff] %v879_v9  ;;  %v824_v13 = vpop.f32.mrf.mxu3  ;;  %1148 = vmatpush.msrb.mxu3 %v1132_v63  ;;  %v1168_v63 = vld [vmem:[#allocation10 + $0x10] sm:$0xff] }
 0x26b   :  { %v882_v14 = vsel %vm1635_vm12, %v880_v10, %v881_v12  ;;  %v829_v16 = vmax.f32 %v787_v1, %v824_v13  ;;  %v1128_v1 = vld [vmem:[#allocation8 + $0x40] sm:$0xff]  ;;  %v1127_v10 = vld [vmem:[#allocation8 + $0x38] sm:$0xff]  ;;  %v1126_v13 = vld [vmem:[#allocation8 + $0x30] sm:$0xff] }
 0x26c   :  { %916 = vst [vmem:[#allocation1 + $0x21] ss:$4 sm:$0xff] %v882_v14 }
 0x26d   :  { %v839_v7 = vrot.slane %v829_v16, 2  ;;  %v884_v18 = vrot.slane %v829_v16, 7 }
 0x26f   :  { %v885_v19 = vsel %vm1635_vm12, %v883_v17, %v884_v18  ;;  %v886_v20 = vrot.slane %v884_v18, 2  ;;  %v887_v8 = vrot.slane %v839_v7, 7  ;;  %v921_v22 = vld.sshfl [vmem:[#allocation1] sm:$0xff pattern:$0x73625140]  ;;  %v1124_v17 = vld [vmem:[#allocation8 + $0x20] sm:$0xff] }
 0x270   :  { %918 = vst [vmem:[#allocation1 + $0x22] ss:$4 sm:$0xff] %v885_v19  ;;  %941 = vmatmul.f32.vlgmr.msrb.gmra.mxu0 %v921_v22  ;;  %v1123_v18 = vld [vmem:[#allocation8 + $0x18] sm:$0xff]  ;;  %v1122_v19 = vld [vmem:[#allocation8 + $0x10] sm:$0xff] }
 0x271   :  { %v888_v23 = vsel %vm1635_vm12, %v886_v20, %v887_v8  ;;  %948 = vst [vmem:[#allocation1] ss:$4 sm:$0xff] %v827_v46  ;;  %v1121_v20 = vld [vmem:[#allocation8 + $0x8] sm:$0xff]  ;;  %v1120_v8 = vld [vmem:[#allocation8] sm:$0xff] }
 0x272   :  { %920 = vst [vmem:[#allocation1 + $0x23] ss:$4 sm:$0xff] %v888_v23 }
 0x273   :  { %950 = vst [vmem:[#allocation1 + $0x1] ss:$4 sm:$0xff] %v833_v44 }
 0x274   :  { %952 = vst [vmem:[#allocation1 + $0x2] ss:$4 sm:$0xff] %v834_v42 }
 0x275   :  { %954 = vst [vmem:[#allocation1 + $0x3] ss:$4 sm:$0xff] %v835_v43 }
 0x279   :  { %v922_v25 = vld.sshfl [vmem:[#allocation1 + $0x20] sm:$0xff pattern:$0x73625140] }
 0x27a   :  { %944 = vmatmul.f32.gmra.mxu0 %v922_v25  ;;  %956 = vst [vmem:[#allocation1 + $0x20] ss:$4 sm:$0xff] %v836_v0 }
 0x27b   :  { %958 = vst [vmem:[#allocation1 + $0x21] ss:$4 sm:$0xff] %v837_v2 }
 0x27c   :  { %v963_v11 = vld.sshfl [vmem:[#allocation1] sm:$0xff pattern:$0x73625140]  ;;  %960 = vst [vmem:[#allocation1 + $0x22] ss:$4 sm:$0xff] %v838_v60 }
 0x27d   :  { %983 = vmatmul.f32.vlgmr.msrb.gmra.mxu1 %v963_v11  ;;  %1007 = vst [vmem:[#allocation1] ss:$4 sm:$0xff] %v833_v44  ;;  %v1181_v11 = vld [vmem:[#allocation10 + $0x78] sm:$0xff] }
 0x27e   :  { %1009 = vst [vmem:[#allocation1 + $0x1] ss:$4 sm:$0xff] %v834_v42  ;;  %v1067_v42 = vmul.f32 %v1263_v33, %v1066_v24  ;;  %1186 = vmatpush.msra.mxu0 %v1181_v11 }
 0x27f   :  { %1011 = vst [vmem:[#allocation1 + $0x2] ss:$4 sm:$0xff] %v835_v43 }
 0x280   :  { %1013 = vst [vmem:[#allocation1 + $0x3] ss:$4 sm:$0xff] %v828_v62  ;;  %v1068_v48 = vadd.f32 %v1263_v33, %v1067_v42 }
 0x281   :  { %962 = vst [vmem:[#allocation1 + $0x23] ss:$4 sm:$0xff] %v829_v16 }
 0x282   :  { %v1070_v51 = vsel %vm1069_vm13, %v1263_v33, %v1068_v48 }
 0x287   :  { %v1022_v26 = vld.sshfl [vmem:[#allocation1] sm:$0xff pattern:$0x73625140] }
 0x288   :  { %1042 = vmatmul.f32.vlgmr.msrb.gmra.mxu2 %v1022_v26  ;;  %v964_v27 = vld.sshfl [vmem:[#allocation1 + $0x20] sm:$0xff pattern:$0x73625140]  ;;  %v1180_v26 = vld [vmem:[#allocation10 + $0x70] sm:$0xff] }
 0x289   :  { %986 = vmatmul.f32.gmra.mxu1 %v964_v27  ;;  %1015 = vst [vmem:[#allocation1 + $0x20] ss:$4 sm:$0xff] %v837_v2  ;;  %v1131_v2 = vld [vmem:[#allocation8 + $0x58] sm:$0xff]  ;;  %1187 = vmatpush.msra.mxu0 %v1180_v26 }
 0x28a   :  { %1017 = vst [vmem:[#allocation1 + $0x21] ss:$4 sm:$0xff] %v838_v60  ;;  %1149 = vmatpush.msrb.mxu3 %v1131_v2  ;;  %v1166_v2 = vld [vmem:[#allocation10] sm:$0xff] }
 0x28b   :  { %1019 = vst [vmem:[#allocation1 + $0x22] ss:$4 sm:$0xff] %v829_v16  ;;  %v1125_v16 = vld [vmem:[#allocation8 + $0x28] sm:$0xff] }
 0x28c   :  { %1021 = vst [vmem:[#allocation1 + $0x23] ss:$4 sm:$0xff] %v839_v7  ;;  %1150 = vmatpush.msrb.mxu3 %v1130_v3 }
 0x28e   :  { %1151 = vmatpush.msrb.mxu3 %v1129_v5 }
 0x290   :  { %1152 = vmatpush.msrb.mxu3 %v1128_v1 }
 0x292   :  { %1153 = vmatpush.msrb.mxu3 %v1127_v10 }
 0x293   :  { %v1023_v28 = vld.sshfl [vmem:[#allocation1 + $0x20] sm:$0xff pattern:$0x73625140] }
 0x294   :  { %1045 = vmatmul.f32.gmra.mxu2 %v1023_v28  ;;  %1154 = vmatpush.msrb.mxu3 %v1126_v13  ;;  %v1179_v28 = vld [vmem:[#allocation10 + $0x68] sm:$0xff] }
 0x295   :  { %1188 = vmatpush.msra.mxu0 %v1179_v28 }
 0x296   :  { %1155 = vmatpush.msrb.mxu3 %v1125_v16 }
 0x298   :  { %1156 = vmatpush.msrb.mxu3 %v1124_v17 }
 0x29a   :  { %1157 = vmatpush.msrb.mxu3 %v1123_v18 }
 0x29c   :  { %1158 = vmatpush.msrb.mxu3 %v1122_v19 }
 0x29e   :  { %1159 = vmatpush.msrb.mxu3 %v1121_v20 }
 0x2a0   :  { %1160 = vmatpush.msrb.mxu3 %v1120_v8 }
 0x2ed   :  { %v942_v30 = vpop.f32.mrf.mxu0 }
 0x2f7   :  { %v945_v34 = vpop.f32.mrf.mxu0 }
 0x2fa   :  { %v984_v29 = vpop.f32.mrf.mxu1 }
 0x2fb   :  { %v985_v21 = vadd.f32 %v984_v29, %v942_v30  ;;  %v1178_v30 = vld [vmem:[#allocation10 + $0x60] sm:$0xff] }
 0x2fc   :  { %1189 = vmatpush.msra.mxu0 %v1178_v30 }
 0x306   :  { %v987_v32 = vpop.f32.mrf.mxu1 }
 0x307   :  { %v988_v35 = vadd.f32 %v987_v32, %v945_v34  ;;  %v1177_v32 = vld [vmem:[#allocation10 + $0x58] sm:$0xff] }
 0x308   :  { %1190 = vmatpush.msra.mxu0 %v1177_v32 }
 0x30b   :  { %v1043_v31 = vpop.f32.mrf.mxu2 }
 0x30c   :  { %v1049_v36 = vadd.f32 %v1043_v31, %v985_v21  ;;  %v1095_v31 = vld [vmem:[%s1694_s7] sm:$0x1]  ;;  %v1176_v21 = vld [vmem:[#allocation10 + $0x50] sm:$0xff] }
 0x30d   :  { %1191 = vmatpush.msra.mxu0 %v1176_v21 }
 0x30e   :  { %v1055_v41 = vadd.f32 %v1254_v37, %v1049_v36 }
 0x317   :  { %v1046_v38 = vpop.f32.mrf.mxu2 }
 0x318   :  { %v1050_v40 = vadd.f32 %v1046_v38, %v988_v35  ;;  %v1175_v35 = vld [vmem:[#allocation10 + $0x48] sm:$0xff]  ;;  %v1174_v38 = vld [vmem:[#allocation10 + $0x40] sm:$0xff] }
 0x319   :  { %1192 = vmatpush.msra.mxu0 %v1175_v35 }
 0x31a   :  { %v1056_v45 = vadd.f32 %v1254_v37, %v1050_v40  ;;  %v1255_v37 = vld [vmem:[%s1695_s8] ss:$0 sm:$0xff] }
 0x31b   :  { %1193 = vmatpush.msra.mxu0 %v1174_v38 }
 0x31c   :  { %v1057_v46 = vadd.f32 %v1056_v45, %v1055_v41 }
 0x31e   :  { %v1058_v44 = vrot.slane %v1057_v46, 4 }
 0x320   :  { %v1059_v43 = vadd.f32 %v1058_v44, %v1057_v46  ;;  %v1172_v46 = vld [vmem:[#allocation10 + $0x30] sm:$0xff] }
 0x322   :  { %v1060_v47 = vrot.slane %v1059_v43, 2 }
 0x324   :  { %v1061_v49 = vadd.f32 %v1060_v47, %v1059_v43  ;;  %v1171_v43 = vld [vmem:[#allocation10 + $0x28] sm:$0xff] }
 0x326   :  { %v1062_v50 = vrot.slane %v1061_v49, 1 }
 0x328   :  { %v1063_v52 = vadd.f32 %v1062_v50, %v1061_v49  ;;  %v1170_v49 = vld [vmem:[#allocation10 + $0x20] sm:$0xff] }
 0x32a   :  { %v1071_v53 = vmul.f32 %v1070_v51, %v1063_v52  ;;  %v1169_v52 = vld [vmem:[#allocation10 + $0x18] sm:$0xff] }
 0x32c   :  { %v1662_v55 = vsub.f32 %v1055_v41, %v1071_v53  ;;  %v1664_v56 = vsub.f32 %v1056_v45, %v1071_v53  ;;  %v1173_v41 = vld [vmem:[#allocation10 + $0x38] sm:$0xff] }
 0x32d   :  { %1194 = vmatpush.msra.mxu0 %v1173_v41 }
 0x32e   :  { %v1074_v57 = vmul.f32 %v1662_v55, %v1662_v55  ;;  %v1075_v59 = vmul.f32 %v1664_v56, %v1664_v56 }
 0x32f   :  { %1195 = vmatpush.msra.mxu0 %v1172_v46 }
 0x330   :  { %v1076_v62 = vadd.f32 %v1075_v59, %v1074_v57 }
 0x331   :  { %1196 = vmatpush.msra.mxu0 %v1171_v43 }
 0x332   :  { %v1077_v0 = vrot.slane %v1076_v62, 4 }
 0x333   :  { %1197 = vmatpush.msra.mxu0 %v1170_v49 }
 0x334   :  { %v1078_v60 = vadd.f32 %v1077_v0, %v1076_v62  ;;  %v1167_v0 = vld [vmem:[#allocation10 + $0x8] sm:$0xff] }
 0x335   :  { %1198 = vmatpush.msra.mxu0 %v1169_v52 }
 0x336   :  { %v1079_v4 = vrot.slane %v1078_v60, 2 }
 0x337   :  { %1199 = vmatpush.msra.mxu0 %v1168_v63 }
 0x338   :  { %v1080_v6 = vadd.f32 %v1079_v4, %v1078_v60  ;;  %v1256_v60 = vld [vmem:[%s1697_s10] ss:$0 sm:$0xff] }
 0x339   :  { %1200 = vmatpush.msra.mxu0 %v1167_v0 }
 0x33a   :  { %v1081_v9 = vrot.slane %v1080_v6, 1 }
 0x33b   :  { %1201 = vmatpush.msra.mxu0 %v1166_v2 }
 0x33c   :  { %v1082_v12 = vadd.f32 %v1081_v9, %v1080_v6  ;;  %v1257_v6 = vld [vmem:[%s1699_s12] ss:$0 sm:$0xff] }
 0x33e   :  { %v1083_v14 = vmul.f32 %v1082_v12, %v1070_v51 }
 0x340   :  { %v1084_v7 = vadd.f32 1e-05, %v1083_v14 }
 0x342   :  { %1264 = vrsqrt.f32 %v1084_v7  ;;  %vm1091_vm15 = vweird.f32 %v1084_v7 }
 0x348   :  { %v1265_v22 = vpop.eup %1264 }
 0x349   :  { %v1086_v23 = vmul.f32 %v1265_v22, %v1084_v7  ;;  %vm1092_vm14 = vweird.f32 %v1265_v22 }
 0x34a   :  { %vm1093_vm0 = vmor %vm1091_vm15, %vm1092_vm14 }
 0x34b   :  { %v1087_v25 = vmul.f32 %v1265_v22, %v1086_v23 }
 0x34d   :  { %v1088_v27 = vmul.f32 0.5, %v1087_v25 }
 0x34f   :  { %v1089_v29 = vsub.f32 1.5, %v1088_v27 }
 0x351   :  { %v1090_v15 = vmul.f32 %v1265_v22, %v1089_v29 }
 0x353   :  { %v1094_v33 = vsel %vm1093_vm0, %v1265_v22, %v1090_v15 }
 0x354   :  { %v1096_v34 = vmul.f32 %v1095_v31, %v1094_v33 }
 0x356   :  { %v1097_v36 = vperm.slane %v1096_v34, 0 }
 0x358   :  { %v1098_v39 = vmul.f32 %v1097_v36, %v1662_v55  ;;  %v1099_v40 = vmul.f32 %v1097_v36, %v1664_v56 }
 0x35a   :  { %v1104_v45 = vadd.f32 %v1255_v37, %v1098_v39  ;;  %v1105_v24 = vadd.f32 %v1255_v37, %v1099_v40 }
 0x35c   :  { %v1106_v44 = vmax.f32 %v1104_v45, 0.0  ;;  %v1107_v42 = vmax.f32 %v1105_v24, 0.0 }
 0x35e   :  { %v1114_v47 = vrot.slane %v1107_v42, 4  ;;  %v1108_v48 = vrot.slane %v1106_v44, 4 }
 0x360   :  { %v1115_v50 = vmax.f32 %v1107_v42, %v1114_v47  ;;  %v1109_v51 = vmax.f32 %v1106_v44, %v1108_v48 }
 0x362   :  { %v1110_v53 = vrot.slane %v1109_v51, 2  ;;  %v1116_v54 = vrot.slane %v1115_v50, 2 }
 0x364   :  { %v1111_v55 = vmax.f32 %v1109_v51, %v1110_v53  ;;  %v1117_v56 = vmax.f32 %v1115_v50, %v1116_v54 }
 0x366   :  { %v1112_v58 = vrot.slane %v1111_v55, 1  ;;  %v1118_v57 = vrot.slane %v1117_v56, 1 }
 0x368   :  { %v1113_v59 = vmax.f32 %v1111_v55, %v1112_v58  ;;  %v1119_v61 = vmax.f32 %v1117_v56, %v1118_v57 }
 0x36a   :  { %v1143_v62 = vsel %vm1142_vm1, %v1119_v61, %v1113_v59 }
 0x36b   :  { %1161 = vmatmul.f32.vlgmr.msrb.gmra.mxu3 %v1143_v62 }
 0x3ee   :  { %v1162_v3 = vpop.f32.mrf.mxu3 }
 0x3ef   :  { %v1163_v4 = vadd.f32 %v1256_v60, %v1162_v3 }
 0x3f1   :  { %v1165_v5 = vmax.f32 %v1163_v4, 0.0 }
 0x3f3   :  { %1202 = vmatmul.f32.vlgmr.msra.gmra.mxu0 %v1165_v5 }
 0x470   :  { %v1203_v1 = vpop.f32.mrf.mxu0 }
 0x471   :  { %v1204_v9 = vadd.f32 %v1257_v6, %v1203_v1 }
 0x473   :  { %1206 = vst [vmem:[#allocation13] sm:$0x3] %v1204_v9 }
 0x474   :  { %1217 = dma.vmem_to_hbm [thread:$0]  %s1213_s0, 32, %s1215_s18, [#allocation4]  }
 0x475   :  { %1442 = dma.done.wait [#allocation4], 32  }
 0x476   :  { %1443 = vsyncadd [#allocation4], 4294967264 }
 0x477   :  { %1222 = vsyncpa [#allocation3], 1 }
 0x478   :  { %1223 = vsyncpa [#allocation6], 1 }
 0x479   :  { %1224 = vsyncpa [#allocation9], 1 }
 0x47a   :  { %1225 = vsyncpa [#allocation12], 1 }
 0x47b   :  { %1226 = vsyncpa [#allocation4], 1 }

</bundles_post_ra>
